<compile_context>
chip_gen: v5e
topology: v5e:2x2
jax: 0.10.0
libtpu: 0.0.40
codegen_flags: <defaults>
</compile_context>

<pallas_src>
import functools

import jax
import jax.numpy as jnp
from jax.experimental import pallas as pl
from jax.experimental.pallas import tpu as pltpu


# ----------------------------------------------------------------------------
# Fused kernel: all LSTM layers + final Linear in one pallas_call.
# ----------------------------------------------------------------------------
def _make_fused_kernel(num_layers, hidden_size, batch_pad, seq_len):
    H, B, T = hidden_size, batch_pad, seq_len

    def kernel(*refs):
        # refs = [x_ref,
        #         (w_ih_t, w_hh_t, b) * num_layers,
        #         w_fc_t, b_fc,
        #         out_ref,
        #         seq_scr, xg_scr]
        x_ref = refs[0]
        layer_refs = refs[1:1 + 3 * num_layers]
        w_fc_t_ref = refs[1 + 3 * num_layers]
        b_fc_ref = refs[2 + 3 * num_layers]
        out_ref = refs[3 + 3 * num_layers]
        seq_scr = refs[4 + 3 * num_layers]   # (T*B, H)  bf16: inter-layer hidden seq
        xg_scr = refs[5 + 3 * num_layers]    # (T*B, 4H) f32 : hoisted input projection

        h_last = jnp.zeros((B, H), jnp.float32)

        for layer in range(num_layers):
            w_ih_ref = layer_refs[3 * layer]       # (in_dim, 4H) bf16, cols [i,f,o,g]
            w_hh_ref = layer_refs[3 * layer + 1]   # (H, 4H)      bf16, cols [i,f,o,g]
            b_ref = layer_refs[3 * layer + 2]      # (1, 4H)      f32 = b_ih + b_hh

            # Layer input: original x for layer 0, previous layer's hidden
            # sequence (resident in VMEM scratch) afterwards.  Both bf16.
            seq_in = x_ref[...] if layer == 0 else seq_scr[...]

            # Hoisted, time-independent projection for ALL timesteps: one big
            # MXU-friendly bf16 GEMM with f32 accumulation.
            xg_scr[...] = (
                jnp.dot(seq_in, w_ih_ref[...], preferred_element_type=jnp.float32)
                + b_ref[...]
            )

            last_layer = layer == num_layers - 1

            def step(t, carry, w_hh_ref=w_hh_ref, last_layer=last_layer):
                h, c = carry                              # f32, kept in vregs
                row = pl.multiple_of(t * B, 8)            # whole-sublane block
                gates = xg_scr[pl.ds(row, B), :] + jnp.dot(
                    h.astype(jnp.bfloat16), w_hh_ref[...],
                    preferred_element_type=jnp.float32,
                )                                         # (B, 4H) f32
                # Columns pre-permuted to [i, f, o, g]:
                # one sigmoid on the contiguous first 3H lanes, one tanh on the last H.
                ifo = jax.nn.sigmoid(gates[:, : 3 * H])
                g_g = jnp.tanh(gates[:, 3 * H:])
                i_g = ifo[:, 0 * H:1 * H]
                f_g = ifo[:, 1 * H:2 * H]
                o_g = ifo[:, 2 * H:3 * H]
                c_new = f_g * c + i_g * g_g
                h_new = o_g * jnp.tanh(c_new)
                if not last_layer:
                    # Only non-final layers need the full hidden sequence.
                    seq_scr[pl.ds(row, B), :] = h_new.astype(jnp.bfloat16)
                return (h_new, c_new)

            h0 = jnp.zeros((B, H), jnp.float32)           # h_0 = c_0 = 0
            c0 = jnp.zeros((B, H), jnp.float32)
            h_last, _ = jax.lax.fori_loop(
                0, T, step, (h0, c0), unroll=min(T, 8)
            )

        # FC epilogue on the last timestep's hidden state (== out[:, -1, :]).
        out_ref[...] = (
            jnp.dot(h_last.astype(jnp.bfloat16), w_fc_t_ref[...],
                    preferred_element_type=jnp.float32)
            + b_fc_ref[...]
        )

    return kernel


# ----------------------------------------------------------------------------
# Wrapper
# ----------------------------------------------------------------------------
@functools.partial(jax.jit, static_argnames=("hidden_size",))
def motion_prediction_forward(x, lstm_params, fc_params, hidden_size):
    """x: (B, T, input_size) batch-first, like the PyTorch module.

    lstm_params / fc_params must come from prepare_kernel_params().
    """
    B, T, I = x.shape
    B_pad = max(8, ((B + 7) // 8) * 8)        # sublane-aligned batch

    # Time-major flatten (row index = t*B_pad + b), batch padded with zeros.
    # TODO(synk): at realistic (B,T,I) fold this transpose into the kernel via a
    # 3-D BlockSpec/grid over T instead of a host-side HBM rewrite.
    x_tm = jnp.transpose(x, (1, 0, 2)).astype(jnp.float32)       # (T, B, I)
    x_tm = jnp.pad(x_tm, ((0, 0), (0, B_pad - B), (0, 0)))
    x2 = x_tm.reshape(T * B_pad, I).astype(jnp.bfloat16)

    num_layers = len(lstm_params)
    w_fc_t, b_fc = fc_params
    out_size = w_fc_t.shape[1]
    flat_lstm = [p for layer in lstm_params for p in layer]

    kernel = _make_fused_kernel(num_layers, hidden_size, B_pad, T)
    n_in = 1 + 3 * num_layers + 2
    vmem = pl.BlockSpec(memory_space=pltpu.MemorySpace.VMEM)

    # Explicit VMEM budget sized from the real footprint (with headroom),
    # clamped to stay valid on v7x's 64 MiB physical VMEM.
    H4 = 4 * hidden_size
    est_bytes = (
        x2.size * 2
        + sum(int(p.size) * p.dtype.itemsize for p in flat_lstm)
        + w_fc_t.size * 2 + b_fc.size * 4
        + T * B_pad * hidden_size * 2          # seq_scr (bf16)
        + T * B_pad * H4 * 4                   # xg_scr  (f32)
        + B_pad * out_size * 4
    )
    vmem_limit = int(min(max(2 * est_bytes, 32 << 20), 64 << 20))

    out = pl.pallas_call(
        kernel,
        out_shape=jax.ShapeDtypeStruct((B_pad, out_size), jnp.float32),
        in_specs=[vmem] * n_in,
        out_specs=vmem,
        scratch_shapes=[
            pltpu.VMEM((T * B_pad, hidden_size), jnp.bfloat16),   # seq_scr
            pltpu.VMEM((T * B_pad, H4), jnp.float32),             # xg_scr
        ],
        compiler_params=pltpu.CompilerParams(vmem_limit_bytes=vmem_limit),
    )(x2, *flat_lstm, w_fc_t, b_fc)
    return out[:B]


# ----------------------------------------------------------------------------
# Parameter preparation: PyTorch layout -> kernel layout.
#   * transpose weights, fuse b_ih + b_hh
#   * permute gate columns [i,f,g,o] -> [i,f,o,g] (contiguous sigmoid block)
#   * matmul operands in bf16, biases in f32
# ----------------------------------------------------------------------------
def prepare_kernel_params(torch_lstm_params, torch_fc_params, hidden_size,
                          matmul_dtype=jnp.bfloat16):
    H = hidden_size

    def permute_cols(w_t):  # (.., 4H) column blocks [i|f|g|o] -> [i|f|o|g]
        return jnp.concatenate(
            [w_t[..., : 2 * H], w_t[..., 3 * H: 4 * H], w_t[..., 2 * H: 3 * H]],
            axis=-1,
        )

    lstm_kp = []
    for (w_ih, w_hh, b_ih, b_hh) in torch_lstm_params:
        w_ih_t = permute_cols(w_ih.T).astype(matmul_dtype)            # (in, 4H)
        w_hh_t = permute_cols(w_hh.T).astype(matmul_dtype)            # (H, 4H)
        b = permute_cols((b_ih + b_hh)[None, :]).astype(jnp.float32)  # (1, 4H)
        lstm_kp.append((w_ih_t, w_hh_t, b))

    w_fc, b_fc = torch_fc_params
    fc_kp = (w_fc.T.astype(matmul_dtype), b_fc[None, :].astype(jnp.float32))
    return tuple(tuple(p) for p in lstm_kp), fc_kp


# ----------------------------------------------------------------------------
# Pure-JAX reference that mirrors PyTorch nn.LSTM + Linear exactly (f32),
# consuming the raw PyTorch-layout parameters.
# ----------------------------------------------------------------------------
def reference_forward(x, torch_lstm_params, torch_fc_params):
    h_seq = jnp.transpose(x, (1, 0, 2)).astype(jnp.float32)   # (T, B, I)
    for (w_ih, w_hh, b_ih, b_hh) in torch_lstm_params:
        _, B, _ = h_seq.shape
        H = w_hh.shape[1]

        def step(carry, x_t):
            h, c = carry
            gates = x_t @ w_ih.T + h @ w_hh.T + b_ih + b_hh
            i_g = jax.nn.sigmoid(gates[:, 0 * H:1 * H])
            f_g = jax.nn.sigmoid(gates[:, 1 * H:2 * H])
            g_g = jnp.tanh(gates[:, 2 * H:3 * H])
            o_g = jax.nn.sigmoid(gates[:, 3 * H:4 * H])
            c_new = f_g * c + i_g * g_g
            h_new = o_g * jnp.tanh(c_new)
            return (h_new, c_new), h_new

        init = (jnp.zeros((B, H), jnp.float32), jnp.zeros((B, H), jnp.float32))
        _, h_seq = jax.lax.scan(step, init, h_seq)
    w_fc, b_fc = torch_fc_params
    return h_seq[-1] @ w_fc.T + b_fc


# ----------------------------------------------------------------------------
# Deterministic parameter construction (PyTorch nn.LSTM / nn.Linear layout).
# ----------------------------------------------------------------------------
def init_torch_params(key, input_size, hidden_size, output_size, num_layers):
    lstm_params = []
    bound = 1.0 / jnp.sqrt(hidden_size)
    for layer in range(num_layers):
        in_dim = input_size if layer == 0 else hidden_size
        key, k1, k2, k3, k4 = jax.random.split(key, 5)
        w_ih = jax.random.uniform(k1, (4 * hidden_size, in_dim), jnp.float32, -bound, bound)
        w_hh = jax.random.uniform(k2, (4 * hidden_size, hidden_size), jnp.float32, -bound, bound)
        b_ih = jax.random.uniform(k3, (4 * hidden_size,), jnp.float32, -bound, bound)
        b_hh = jax.random.uniform(k4, (4 * hidden_size,), jnp.float32, -bound, bound)
        lstm_params.append((w_ih, w_hh, b_ih, b_hh))

    key, k5, k6 = jax.random.split(key, 3)
    w_fc = jax.random.uniform(k5, (output_size, hidden_size), jnp.float32, -bound, bound)
    b_fc = jax.random.uniform(k6, (output_size,), jnp.float32, -bound, bound)
    return tuple(tuple(p) for p in lstm_params), (w_fc, b_fc)


if __name__ == "__main__":
    input_size, hidden_size, output_size, num_layers = 4, 32, 4, 2
    batch, seq = 2, 8

    key = jax.random.PRNGKey(0)
    key, xkey = jax.random.split(key)
    x = jax.random.normal(xkey, (batch, seq, input_size), jnp.float32)

    torch_lstm, torch_fc = init_torch_params(
        key, input_size, hidden_size, output_size, num_layers)
    lstm_params, fc_params = prepare_kernel_params(torch_lstm, torch_fc, hidden_size)

    out = motion_prediction_forward(x, lstm_params, fc_params, hidden_size)
    jax.block_until_ready(out)
    assert out.shape == (batch, output_size), out.shape

    ref = reference_forward(x, torch_lstm, torch_fc)
    # bf16 matmul operands (f32 accumulation / f32 gate math) vs f32 reference.
    assert jnp.allclose(out, ref, rtol=2e-2, atol=2e-2), (out, ref)

    print("KERNEL_OK")
</pallas_src>

<mosaic_0001>
module attributes {stable_mosaic.version = 11 : i64} {
  func.func @kernel(%arg0: memref<64x4xbf16, #tpu.memory_space<vmem>>, %arg1: memref<4x128xbf16, #tpu.memory_space<vmem>>, %arg2: memref<32x128xbf16, #tpu.memory_space<vmem>>, %arg3: memref<1x128xf32, #tpu.memory_space<vmem>>, %arg4: memref<32x128xbf16, #tpu.memory_space<vmem>>, %arg5: memref<32x128xbf16, #tpu.memory_space<vmem>>, %arg6: memref<1x128xf32, #tpu.memory_space<vmem>>, %arg7: memref<32x4xbf16, #tpu.memory_space<vmem>>, %arg8: memref<1x4xf32, #tpu.memory_space<vmem>>, %arg9: memref<8x4xf32, #tpu.memory_space<vmem>>, %arg10: memref<64x32xbf16, #tpu.memory_space<vmem>>, %arg11: memref<64x128xf32, #tpu.memory_space<vmem>>) attributes {dimension_semantics = [], scalar_prefetch = 0 : i64, scratch_operands = 2 : i64, tpu.core_type = #tpu.core_type<tc>} {
    %c0 = arith.constant 0 : index
    %c0_0 = arith.constant 0 : index
    %0 = vector.load %arg0[%c0, %c0_0] : memref<64x4xbf16, #tpu.memory_space<vmem>>, vector<64x4xbf16>
    %c0_1 = arith.constant 0 : index
    %c0_2 = arith.constant 0 : index
    %1 = vector.load %arg1[%c0_1, %c0_2] : memref<4x128xbf16, #tpu.memory_space<vmem>>, vector<4x128xbf16>
    %cst = arith.constant dense<0.000000e+00> : vector<64x128xf32>
    %2 = tpu.matmul %0, %1, %cst {dimension_numbers = #tpu.dot_dimension_numbers<[1], [0], [0], [1], [0, 0, 1, 1], [], []>} : vector<64x4xbf16>, vector<4x128xbf16>, vector<64x128xf32> -> vector<64x128xf32>
    %c0_3 = arith.constant 0 : index
    %c0_4 = arith.constant 0 : index
    %3 = vector.load %arg3[%c0_3, %c0_4] : memref<1x128xf32, #tpu.memory_space<vmem>>, vector<1x128xf32>
    %4 = vector.broadcast %3 : vector<1x128xf32> to vector<64x128xf32>
    %5 = arith.addf %2, %4 : vector<64x128xf32>
    %c0_5 = arith.constant 0 : index
    %c0_6 = arith.constant 0 : index
    %6 = vector.load %arg11[%c0_5, %c0_6] : memref<64x128xf32, #tpu.memory_space<vmem>>, vector<64x128xf32>
    tpu.vector_store %arg11[%c0_5, %c0_6], %5 {strides = array<i32>} : memref<64x128xf32, #tpu.memory_space<vmem>>, vector<64x128xf32>,
    %cst_7 = arith.constant 0.000000e+00 : f32
    %7 = vector.broadcast %cst_7 : f32 to vector<8x32xf32>
    %cst_8 = arith.constant 0.000000e+00 : f32
    %8 = vector.broadcast %cst_8 : f32 to vector<8x32xf32>
    %c0_i32 = arith.constant 0 : i32
    %c8_i32 = arith.constant 8 : i32
    %9 = arith.muli %c0_i32, %c8_i32 : i32
    %10 = tpu.assume_multiple %9, 8 : i32
    %11 = arith.index_cast %10 : i32 to index
    %c0_9 = arith.constant 0 : index
    %12 = vector.load %arg11[%11, %c0_9] : memref<64x128xf32, #tpu.memory_space<vmem>>, vector<8x128xf32>
    %13 = arith.truncf %7 : vector<8x32xf32> to vector<8x32xbf16>
    %c0_10 = arith.constant 0 : index
    %c0_11 = arith.constant 0 : index
    %14 = vector.load %arg2[%c0_10, %c0_11] : memref<32x128xbf16, #tpu.memory_space<vmem>>, vector<32x128xbf16>
    %cst_12 = arith.constant dense<0.000000e+00> : vector<8x128xf32>
    %15 = tpu.matmul %13, %14, %cst_12 {dimension_numbers = #tpu.dot_dimension_numbers<[1], [0], [0], [1], [0, 0, 1, 1], [], []>} : vector<8x32xbf16>, vector<32x128xbf16>, vector<8x128xf32> -> vector<8x128xf32>
    %16 = arith.addf %12, %15 : vector<8x128xf32>
    %17 = vector.extract_strided_slice %16 {offsets = [0, 0], sizes = [8, 96], strides = [1, 1]} : vector<8x128xf32> to vector<8x96xf32>
    %18 = arith.negf %17 : vector<8x96xf32>
    %19 = math.exp %18 : vector<8x96xf32>
    %cst_13 = arith.constant 1.000000e+00 : f32
    %20 = vector.broadcast %cst_13 : f32 to vector<8x96xf32>
    %21 = arith.addf %20, %19 : vector<8x96xf32>
    %22 = arith.divf %20, %21 : vector<8x96xf32>
    %23 = vector.extract_strided_slice %16 {offsets = [0, 96], sizes = [8, 32], strides = [1, 1]} : vector<8x128xf32> to vector<8x32xf32>
    %24 = math.tanh %23 : vector<8x32xf32>
    %25 = vector.extract_strided_slice %22 {offsets = [0, 0], sizes = [8, 32], strides = [1, 1]} : vector<8x96xf32> to vector<8x32xf32>
    %26 = vector.extract_strided_slice %22 {offsets = [0, 32], sizes = [8, 32], strides = [1, 1]} : vector<8x96xf32> to vector<8x32xf32>
    %27 = vector.extract_strided_slice %22 {offsets = [0, 64], sizes = [8, 32], strides = [1, 1]} : vector<8x96xf32> to vector<8x32xf32>
    %28 = arith.mulf %26, %8 : vector<8x32xf32>
    %29 = arith.mulf %25, %24 : vector<8x32xf32>
    %30 = arith.addf %28, %29 : vector<8x32xf32>
    %31 = math.tanh %30 : vector<8x32xf32>
    %32 = arith.mulf %27, %31 : vector<8x32xf32>
    %33 = arith.truncf %32 : vector<8x32xf32> to vector<8x32xbf16>
    %34 = arith.index_cast %10 : i32 to index
    %c0_14 = arith.constant 0 : index
    %35 = vector.load %arg10[%34, %c0_14] : memref<64x32xbf16, #tpu.memory_space<vmem>>, vector<8x32xbf16>
    tpu.vector_store %arg10[%34, %c0_14], %33 {strides = array<i32>} : memref<64x32xbf16, #tpu.memory_space<vmem>>, vector<8x32xbf16>,
    %c1_i32 = arith.constant 1 : i32
    %c8_i32_15 = arith.constant 8 : i32
    %36 = arith.muli %c1_i32, %c8_i32_15 : i32
    %37 = tpu.assume_multiple %36, 8 : i32
    %38 = arith.index_cast %37 : i32 to index
    %c0_16 = arith.constant 0 : index
    %39 = vector.load %arg11[%38, %c0_16] : memref<64x128xf32, #tpu.memory_space<vmem>>, vector<8x128xf32>
    %40 = arith.truncf %32 : vector<8x32xf32> to vector<8x32xbf16>
    %c0_17 = arith.constant 0 : index
    %c0_18 = arith.constant 0 : index
    %41 = vector.load %arg2[%c0_17, %c0_18] : memref<32x128xbf16, #tpu.memory_space<vmem>>, vector<32x128xbf16>
    %cst_19 = arith.constant dense<0.000000e+00> : vector<8x128xf32>
    %42 = tpu.matmul %40, %41, %cst_19 {dimension_numbers = #tpu.dot_dimension_numbers<[1], [0], [0], [1], [0, 0, 1, 1], [], []>} : vector<8x32xbf16>, vector<32x128xbf16>, vector<8x128xf32> -> vector<8x128xf32>
    %43 = arith.addf %39, %42 : vector<8x128xf32>
    %44 = vector.extract_strided_slice %43 {offsets = [0, 0], sizes = [8, 96], strides = [1, 1]} : vector<8x128xf32> to vector<8x96xf32>
    %45 = arith.negf %44 : vector<8x96xf32>
    %46 = math.exp %45 : vector<8x96xf32>
    %cst_20 = arith.constant 1.000000e+00 : f32
    %47 = vector.broadcast %cst_20 : f32 to vector<8x96xf32>
    %48 = arith.addf %47, %46 : vector<8x96xf32>
    %49 = arith.divf %47, %48 : vector<8x96xf32>
    %50 = vector.extract_strided_slice %43 {offsets = [0, 96], sizes = [8, 32], strides = [1, 1]} : vector<8x128xf32> to vector<8x32xf32>
    %51 = math.tanh %50 : vector<8x32xf32>
    %52 = vector.extract_strided_slice %49 {offsets = [0, 0], sizes = [8, 32], strides = [1, 1]} : vector<8x96xf32> to vector<8x32xf32>
    %53 = vector.extract_strided_slice %49 {offsets = [0, 32], sizes = [8, 32], strides = [1, 1]} : vector<8x96xf32> to vector<8x32xf32>
    %54 = vector.extract_strided_slice %49 {offsets = [0, 64], sizes = [8, 32], strides = [1, 1]} : vector<8x96xf32> to vector<8x32xf32>
    %55 = arith.mulf %53, %30 : vector<8x32xf32>
    %56 = arith.mulf %52, %51 : vector<8x32xf32>
    %57 = arith.addf %55, %56 : vector<8x32xf32>
    %58 = math.tanh %57 : vector<8x32xf32>
    %59 = arith.mulf %54, %58 : vector<8x32xf32>
    %60 = arith.truncf %59 : vector<8x32xf32> to vector<8x32xbf16>
    %61 = arith.index_cast %37 : i32 to index
    %c0_21 = arith.constant 0 : index
    %62 = vector.load %arg10[%61, %c0_21] : memref<64x32xbf16, #tpu.memory_space<vmem>>, vector<8x32xbf16>
    tpu.vector_store %arg10[%61, %c0_21], %60 {strides = array<i32>} : memref<64x32xbf16, #tpu.memory_space<vmem>>, vector<8x32xbf16>,
    %c2_i32 = arith.constant 2 : i32
    %c8_i32_22 = arith.constant 8 : i32
    %63 = arith.muli %c2_i32, %c8_i32_22 : i32
    %64 = tpu.assume_multiple %63, 8 : i32
    %65 = arith.index_cast %64 : i32 to index
    %c0_23 = arith.constant 0 : index
    %66 = vector.load %arg11[%65, %c0_23] : memref<64x128xf32, #tpu.memory_space<vmem>>, vector<8x128xf32>
    %67 = arith.truncf %59 : vector<8x32xf32> to vector<8x32xbf16>
    %c0_24 = arith.constant 0 : index
    %c0_25 = arith.constant 0 : index
    %68 = vector.load %arg2[%c0_24, %c0_25] : memref<32x128xbf16, #tpu.memory_space<vmem>>, vector<32x128xbf16>
    %cst_26 = arith.constant dense<0.000000e+00> : vector<8x128xf32>
    %69 = tpu.matmul %67, %68, %cst_26 {dimension_numbers = #tpu.dot_dimension_numbers<[1], [0], [0], [1], [0, 0, 1, 1], [], []>} : vector<8x32xbf16>, vector<32x128xbf16>, vector<8x128xf32> -> vector<8x128xf32>
    %70 = arith.addf %66, %69 : vector<8x128xf32>
    %71 = vector.extract_strided_slice %70 {offsets = [0, 0], sizes = [8, 96], strides = [1, 1]} : vector<8x128xf32> to vector<8x96xf32>
    %72 = arith.negf %71 : vector<8x96xf32>
    %73 = math.exp %72 : vector<8x96xf32>
    %cst_27 = arith.constant 1.000000e+00 : f32
    %74 = vector.broadcast %cst_27 : f32 to vector<8x96xf32>
    %75 = arith.addf %74, %73 : vector<8x96xf32>
    %76 = arith.divf %74, %75 : vector<8x96xf32>
    %77 = vector.extract_strided_slice %70 {offsets = [0, 96], sizes = [8, 32], strides = [1, 1]} : vector<8x128xf32> to vector<8x32xf32>
    %78 = math.tanh %77 : vector<8x32xf32>
    %79 = vector.extract_strided_slice %76 {offsets = [0, 0], sizes = [8, 32], strides = [1, 1]} : vector<8x96xf32> to vector<8x32xf32>
    %80 = vector.extract_strided_slice %76 {offsets = [0, 32], sizes = [8, 32], strides = [1, 1]} : vector<8x96xf32> to vector<8x32xf32>
    %81 = vector.extract_strided_slice %76 {offsets = [0, 64], sizes = [8, 32], strides = [1, 1]} : vector<8x96xf32> to vector<8x32xf32>
    %82 = arith.mulf %80, %57 : vector<8x32xf32>
    %83 = arith.mulf %79, %78 : vector<8x32xf32>
    %84 = arith.addf %82, %83 : vector<8x32xf32>
    %85 = math.tanh %84 : vector<8x32xf32>
    %86 = arith.mulf %81, %85 : vector<8x32xf32>
    %87 = arith.truncf %86 : vector<8x32xf32> to vector<8x32xbf16>
    %88 = arith.index_cast %64 : i32 to index
    %c0_28 = arith.constant 0 : index
    %89 = vector.load %arg10[%88, %c0_28] : memref<64x32xbf16, #tpu.memory_space<vmem>>, vector<8x32xbf16>
    tpu.vector_store %arg10[%88, %c0_28], %87 {strides = array<i32>} : memref<64x32xbf16, #tpu.memory_space<vmem>>, vector<8x32xbf16>,
    %c3_i32 = arith.constant 3 : i32
    %c8_i32_29 = arith.constant 8 : i32
    %90 = arith.muli %c3_i32, %c8_i32_29 : i32
    %91 = tpu.assume_multiple %90, 8 : i32
    %92 = arith.index_cast %91 : i32 to index
    %c0_30 = arith.constant 0 : index
    %93 = vector.load %arg11[%92, %c0_30] : memref<64x128xf32, #tpu.memory_space<vmem>>, vector<8x128xf32>
    %94 = arith.truncf %86 : vector<8x32xf32> to vector<8x32xbf16>
    %c0_31 = arith.constant 0 : index
    %c0_32 = arith.constant 0 : index
    %95 = vector.load %arg2[%c0_31, %c0_32] : memref<32x128xbf16, #tpu.memory_space<vmem>>, vector<32x128xbf16>
    %cst_33 = arith.constant dense<0.000000e+00> : vector<8x128xf32>
    %96 = tpu.matmul %94, %95, %cst_33 {dimension_numbers = #tpu.dot_dimension_numbers<[1], [0], [0], [1], [0, 0, 1, 1], [], []>} : vector<8x32xbf16>, vector<32x128xbf16>, vector<8x128xf32> -> vector<8x128xf32>
    %97 = arith.addf %93, %96 : vector<8x128xf32>
    %98 = vector.extract_strided_slice %97 {offsets = [0, 0], sizes = [8, 96], strides = [1, 1]} : vector<8x128xf32> to vector<8x96xf32>
    %99 = arith.negf %98 : vector<8x96xf32>
    %100 = math.exp %99 : vector<8x96xf32>
    %cst_34 = arith.constant 1.000000e+00 : f32
    %101 = vector.broadcast %cst_34 : f32 to vector<8x96xf32>
    %102 = arith.addf %101, %100 : vector<8x96xf32>
    %103 = arith.divf %101, %102 : vector<8x96xf32>
    %104 = vector.extract_strided_slice %97 {offsets = [0, 96], sizes = [8, 32], strides = [1, 1]} : vector<8x128xf32> to vector<8x32xf32>
    %105 = math.tanh %104 : vector<8x32xf32>
    %106 = vector.extract_strided_slice %103 {offsets = [0, 0], sizes = [8, 32], strides = [1, 1]} : vector<8x96xf32> to vector<8x32xf32>
    %107 = vector.extract_strided_slice %103 {offsets = [0, 32], sizes = [8, 32], strides = [1, 1]} : vector<8x96xf32> to vector<8x32xf32>
    %108 = vector.extract_strided_slice %103 {offsets = [0, 64], sizes = [8, 32], strides = [1, 1]} : vector<8x96xf32> to vector<8x32xf32>
    %109 = arith.mulf %107, %84 : vector<8x32xf32>
    %110 = arith.mulf %106, %105 : vector<8x32xf32>
    %111 = arith.addf %109, %110 : vector<8x32xf32>
    %112 = math.tanh %111 : vector<8x32xf32>
    %113 = arith.mulf %108, %112 : vector<8x32xf32>
    %114 = arith.truncf %113 : vector<8x32xf32> to vector<8x32xbf16>
    %115 = arith.index_cast %91 : i32 to index
    %c0_35 = arith.constant 0 : index
    %116 = vector.load %arg10[%115, %c0_35] : memref<64x32xbf16, #tpu.memory_space<vmem>>, vector<8x32xbf16>
    tpu.vector_store %arg10[%115, %c0_35], %114 {strides = array<i32>} : memref<64x32xbf16, #tpu.memory_space<vmem>>, vector<8x32xbf16>,
    %c4_i32 = arith.constant 4 : i32
    %c8_i32_36 = arith.constant 8 : i32
    %117 = arith.muli %c4_i32, %c8_i32_36 : i32
    %118 = tpu.assume_multiple %117, 8 : i32
    %119 = arith.index_cast %118 : i32 to index
    %c0_37 = arith.constant 0 : index
    %120 = vector.load %arg11[%119, %c0_37] : memref<64x128xf32, #tpu.memory_space<vmem>>, vector<8x128xf32>
    %121 = arith.truncf %113 : vector<8x32xf32> to vector<8x32xbf16>
    %c0_38 = arith.constant 0 : index
    %c0_39 = arith.constant 0 : index
    %122 = vector.load %arg2[%c0_38, %c0_39] : memref<32x128xbf16, #tpu.memory_space<vmem>>, vector<32x128xbf16>
    %cst_40 = arith.constant dense<0.000000e+00> : vector<8x128xf32>
    %123 = tpu.matmul %121, %122, %cst_40 {dimension_numbers = #tpu.dot_dimension_numbers<[1], [0], [0], [1], [0, 0, 1, 1], [], []>} : vector<8x32xbf16>, vector<32x128xbf16>, vector<8x128xf32> -> vector<8x128xf32>
    %124 = arith.addf %120, %123 : vector<8x128xf32>
    %125 = vector.extract_strided_slice %124 {offsets = [0, 0], sizes = [8, 96], strides = [1, 1]} : vector<8x128xf32> to vector<8x96xf32>
    %126 = arith.negf %125 : vector<8x96xf32>
    %127 = math.exp %126 : vector<8x96xf32>
    %cst_41 = arith.constant 1.000000e+00 : f32
    %128 = vector.broadcast %cst_41 : f32 to vector<8x96xf32>
    %129 = arith.addf %128, %127 : vector<8x96xf32>
    %130 = arith.divf %128, %129 : vector<8x96xf32>
    %131 = vector.extract_strided_slice %124 {offsets = [0, 96], sizes = [8, 32], strides = [1, 1]} : vector<8x128xf32> to vector<8x32xf32>
    %132 = math.tanh %131 : vector<8x32xf32>
    %133 = vector.extract_strided_slice %130 {offsets = [0, 0], sizes = [8, 32], strides = [1, 1]} : vector<8x96xf32> to vector<8x32xf32>
    %134 = vector.extract_strided_slice %130 {offsets = [0, 32], sizes = [8, 32], strides = [1, 1]} : vector<8x96xf32> to vector<8x32xf32>
    %135 = vector.extract_strided_slice %130 {offsets = [0, 64], sizes = [8, 32], strides = [1, 1]} : vector<8x96xf32> to vector<8x32xf32>
    %136 = arith.mulf %134, %111 : vector<8x32xf32>
    %137 = arith.mulf %133, %132 : vector<8x32xf32>
    %138 = arith.addf %136, %137 : vector<8x32xf32>
    %139 = math.tanh %138 : vector<8x32xf32>
    %140 = arith.mulf %135, %139 : vector<8x32xf32>
    %141 = arith.truncf %140 : vector<8x32xf32> to vector<8x32xbf16>
    %142 = arith.index_cast %118 : i32 to index
    %c0_42 = arith.constant 0 : index
    %143 = vector.load %arg10[%142, %c0_42] : memref<64x32xbf16, #tpu.memory_space<vmem>>, vector<8x32xbf16>
    tpu.vector_store %arg10[%142, %c0_42], %141 {strides = array<i32>} : memref<64x32xbf16, #tpu.memory_space<vmem>>, vector<8x32xbf16>,
    %c5_i32 = arith.constant 5 : i32
    %c8_i32_43 = arith.constant 8 : i32
    %144 = arith.muli %c5_i32, %c8_i32_43 : i32
    %145 = tpu.assume_multiple %144, 8 : i32
    %146 = arith.index_cast %145 : i32 to index
    %c0_44 = arith.constant 0 : index
    %147 = vector.load %arg11[%146, %c0_44] : memref<64x128xf32, #tpu.memory_space<vmem>>, vector<8x128xf32>
    %148 = arith.truncf %140 : vector<8x32xf32> to vector<8x32xbf16>
    %c0_45 = arith.constant 0 : index
    %c0_46 = arith.constant 0 : index
    %149 = vector.load %arg2[%c0_45, %c0_46] : memref<32x128xbf16, #tpu.memory_space<vmem>>, vector<32x128xbf16>
    %cst_47 = arith.constant dense<0.000000e+00> : vector<8x128xf32>
    %150 = tpu.matmul %148, %149, %cst_47 {dimension_numbers = #tpu.dot_dimension_numbers<[1], [0], [0], [1], [0, 0, 1, 1], [], []>} : vector<8x32xbf16>, vector<32x128xbf16>, vector<8x128xf32> -> vector<8x128xf32>
    %151 = arith.addf %147, %150 : vector<8x128xf32>
    %152 = vector.extract_strided_slice %151 {offsets = [0, 0], sizes = [8, 96], strides = [1, 1]} : vector<8x128xf32> to vector<8x96xf32>
    %153 = arith.negf %152 : vector<8x96xf32>
    %154 = math.exp %153 : vector<8x96xf32>
    %cst_48 = arith.constant 1.000000e+00 : f32
    %155 = vector.broadcast %cst_48 : f32 to vector<8x96xf32>
    %156 = arith.addf %155, %154 : vector<8x96xf32>
    %157 = arith.divf %155, %156 : vector<8x96xf32>
    %158 = vector.extract_strided_slice %151 {offsets = [0, 96], sizes = [8, 32], strides = [1, 1]} : vector<8x128xf32> to vector<8x32xf32>
    %159 = math.tanh %158 : vector<8x32xf32>
    %160 = vector.extract_strided_slice %157 {offsets = [0, 0], sizes = [8, 32], strides = [1, 1]} : vector<8x96xf32> to vector<8x32xf32>
    %161 = vector.extract_strided_slice %157 {offsets = [0, 32], sizes = [8, 32], strides = [1, 1]} : vector<8x96xf32> to vector<8x32xf32>
    %162 = vector.extract_strided_slice %157 {offsets = [0, 64], sizes = [8, 32], strides = [1, 1]} : vector<8x96xf32> to vector<8x32xf32>
    %163 = arith.mulf %161, %138 : vector<8x32xf32>
    %164 = arith.mulf %160, %159 : vector<8x32xf32>
    %165 = arith.addf %163, %164 : vector<8x32xf32>
    %166 = math.tanh %165 : vector<8x32xf32>
    %167 = arith.mulf %162, %166 : vector<8x32xf32>
    %168 = arith.truncf %167 : vector<8x32xf32> to vector<8x32xbf16>
    %169 = arith.index_cast %145 : i32 to index
    %c0_49 = arith.constant 0 : index
    %170 = vector.load %arg10[%169, %c0_49] : memref<64x32xbf16, #tpu.memory_space<vmem>>, vector<8x32xbf16>
    tpu.vector_store %arg10[%169, %c0_49], %168 {strides = array<i32>} : memref<64x32xbf16, #tpu.memory_space<vmem>>, vector<8x32xbf16>,
    %c6_i32 = arith.constant 6 : i32
    %c8_i32_50 = arith.constant 8 : i32
    %171 = arith.muli %c6_i32, %c8_i32_50 : i32
    %172 = tpu.assume_multiple %171, 8 : i32
    %173 = arith.index_cast %172 : i32 to index
    %c0_51 = arith.constant 0 : index
    %174 = vector.load %arg11[%173, %c0_51] : memref<64x128xf32, #tpu.memory_space<vmem>>, vector<8x128xf32>
    %175 = arith.truncf %167 : vector<8x32xf32> to vector<8x32xbf16>
    %c0_52 = arith.constant 0 : index
    %c0_53 = arith.constant 0 : index
    %176 = vector.load %arg2[%c0_52, %c0_53] : memref<32x128xbf16, #tpu.memory_space<vmem>>, vector<32x128xbf16>
    %cst_54 = arith.constant dense<0.000000e+00> : vector<8x128xf32>
    %177 = tpu.matmul %175, %176, %cst_54 {dimension_numbers = #tpu.dot_dimension_numbers<[1], [0], [0], [1], [0, 0, 1, 1], [], []>} : vector<8x32xbf16>, vector<32x128xbf16>, vector<8x128xf32> -> vector<8x128xf32>
    %178 = arith.addf %174, %177 : vector<8x128xf32>
    %179 = vector.extract_strided_slice %178 {offsets = [0, 0], sizes = [8, 96], strides = [1, 1]} : vector<8x128xf32> to vector<8x96xf32>
    %180 = arith.negf %179 : vector<8x96xf32>
    %181 = math.exp %180 : vector<8x96xf32>
    %cst_55 = arith.constant 1.000000e+00 : f32
    %182 = vector.broadcast %cst_55 : f32 to vector<8x96xf32>
    %183 = arith.addf %182, %181 : vector<8x96xf32>
    %184 = arith.divf %182, %183 : vector<8x96xf32>
    %185 = vector.extract_strided_slice %178 {offsets = [0, 96], sizes = [8, 32], strides = [1, 1]} : vector<8x128xf32> to vector<8x32xf32>
    %186 = math.tanh %185 : vector<8x32xf32>
    %187 = vector.extract_strided_slice %184 {offsets = [0, 0], sizes = [8, 32], strides = [1, 1]} : vector<8x96xf32> to vector<8x32xf32>
    %188 = vector.extract_strided_slice %184 {offsets = [0, 32], sizes = [8, 32], strides = [1, 1]} : vector<8x96xf32> to vector<8x32xf32>
    %189 = vector.extract_strided_slice %184 {offsets = [0, 64], sizes = [8, 32], strides = [1, 1]} : vector<8x96xf32> to vector<8x32xf32>
    %190 = arith.mulf %188, %165 : vector<8x32xf32>
    %191 = arith.mulf %187, %186 : vector<8x32xf32>
    %192 = arith.addf %190, %191 : vector<8x32xf32>
    %193 = math.tanh %192 : vector<8x32xf32>
    %194 = arith.mulf %189, %193 : vector<8x32xf32>
    %195 = arith.truncf %194 : vector<8x32xf32> to vector<8x32xbf16>
    %196 = arith.index_cast %172 : i32 to index
    %c0_56 = arith.constant 0 : index
    %197 = vector.load %arg10[%196, %c0_56] : memref<64x32xbf16, #tpu.memory_space<vmem>>, vector<8x32xbf16>
    tpu.vector_store %arg10[%196, %c0_56], %195 {strides = array<i32>} : memref<64x32xbf16, #tpu.memory_space<vmem>>, vector<8x32xbf16>,
    %c7_i32 = arith.constant 7 : i32
    %c8_i32_57 = arith.constant 8 : i32
    %198 = arith.muli %c7_i32, %c8_i32_57 : i32
    %199 = tpu.assume_multiple %198, 8 : i32
    %200 = arith.index_cast %199 : i32 to index
    %c0_58 = arith.constant 0 : index
    %201 = vector.load %arg11[%200, %c0_58] : memref<64x128xf32, #tpu.memory_space<vmem>>, vector<8x128xf32>
    %202 = arith.truncf %194 : vector<8x32xf32> to vector<8x32xbf16>
    %c0_59 = arith.constant 0 : index
    %c0_60 = arith.constant 0 : index
    %203 = vector.load %arg2[%c0_59, %c0_60] : memref<32x128xbf16, #tpu.memory_space<vmem>>, vector<32x128xbf16>
    %cst_61 = arith.constant dense<0.000000e+00> : vector<8x128xf32>
    %204 = tpu.matmul %202, %203, %cst_61 {dimension_numbers = #tpu.dot_dimension_numbers<[1], [0], [0], [1], [0, 0, 1, 1], [], []>} : vector<8x32xbf16>, vector<32x128xbf16>, vector<8x128xf32> -> vector<8x128xf32>
    %205 = arith.addf %201, %204 : vector<8x128xf32>
    %206 = vector.extract_strided_slice %205 {offsets = [0, 0], sizes = [8, 96], strides = [1, 1]} : vector<8x128xf32> to vector<8x96xf32>
    %207 = arith.negf %206 : vector<8x96xf32>
    %208 = math.exp %207 : vector<8x96xf32>
    %cst_62 = arith.constant 1.000000e+00 : f32
    %209 = vector.broadcast %cst_62 : f32 to vector<8x96xf32>
    %210 = arith.addf %209, %208 : vector<8x96xf32>
    %211 = arith.divf %209, %210 : vector<8x96xf32>
    %212 = vector.extract_strided_slice %205 {offsets = [0, 96], sizes = [8, 32], strides = [1, 1]} : vector<8x128xf32> to vector<8x32xf32>
    %213 = math.tanh %212 : vector<8x32xf32>
    %214 = vector.extract_strided_slice %211 {offsets = [0, 0], sizes = [8, 32], strides = [1, 1]} : vector<8x96xf32> to vector<8x32xf32>
    %215 = vector.extract_strided_slice %211 {offsets = [0, 32], sizes = [8, 32], strides = [1, 1]} : vector<8x96xf32> to vector<8x32xf32>
    %216 = vector.extract_strided_slice %211 {offsets = [0, 64], sizes = [8, 32], strides = [1, 1]} : vector<8x96xf32> to vector<8x32xf32>
    %217 = arith.mulf %215, %192 : vector<8x32xf32>
    %218 = arith.mulf %214, %213 : vector<8x32xf32>
    %219 = arith.addf %217, %218 : vector<8x32xf32>
    %220 = math.tanh %219 : vector<8x32xf32>
    %221 = arith.mulf %216, %220 : vector<8x32xf32>
    %222 = arith.truncf %221 : vector<8x32xf32> to vector<8x32xbf16>
    %223 = arith.index_cast %199 : i32 to index
    %c0_63 = arith.constant 0 : index
    %224 = vector.load %arg10[%223, %c0_63] : memref<64x32xbf16, #tpu.memory_space<vmem>>, vector<8x32xbf16>
    tpu.vector_store %arg10[%223, %c0_63], %222 {strides = array<i32>} : memref<64x32xbf16, #tpu.memory_space<vmem>>, vector<8x32xbf16>,
    %c8_i32_64 = arith.constant 8 : i32
    %c0_65 = arith.constant 0 : index
    %c0_66 = arith.constant 0 : index
    %225 = vector.load %arg10[%c0_65, %c0_66] : memref<64x32xbf16, #tpu.memory_space<vmem>>, vector<64x32xbf16>
    %c0_67 = arith.constant 0 : index
    %c0_68 = arith.constant 0 : index
    %226 = vector.load %arg4[%c0_67, %c0_68] : memref<32x128xbf16, #tpu.memory_space<vmem>>, vector<32x128xbf16>
    %cst_69 = arith.constant dense<0.000000e+00> : vector<64x128xf32>
    %227 = tpu.matmul %225, %226, %cst_69 {dimension_numbers = #tpu.dot_dimension_numbers<[1], [0], [0], [1], [0, 0, 1, 1], [], []>} : vector<64x32xbf16>, vector<32x128xbf16>, vector<64x128xf32> -> vector<64x128xf32>
    %c0_70 = arith.constant 0 : index
    %c0_71 = arith.constant 0 : index
    %228 = vector.load %arg6[%c0_70, %c0_71] : memref<1x128xf32, #tpu.memory_space<vmem>>, vector<1x128xf32>
    %229 = vector.broadcast %228 : vector<1x128xf32> to vector<64x128xf32>
    %230 = arith.addf %227, %229 : vector<64x128xf32>
    %c0_72 = arith.constant 0 : index
    %c0_73 = arith.constant 0 : index
    %231 = vector.load %arg11[%c0_72, %c0_73] : memref<64x128xf32, #tpu.memory_space<vmem>>, vector<64x128xf32>
    tpu.vector_store %arg11[%c0_72, %c0_73], %230 {strides = array<i32>} : memref<64x128xf32, #tpu.memory_space<vmem>>, vector<64x128xf32>,
    %cst_74 = arith.constant 0.000000e+00 : f32
    %232 = vector.broadcast %cst_74 : f32 to vector<8x32xf32>
    %cst_75 = arith.constant 0.000000e+00 : f32
    %233 = vector.broadcast %cst_75 : f32 to vector<8x32xf32>
    %c0_i32_76 = arith.constant 0 : i32
    %c8_i32_77 = arith.constant 8 : i32
    %234 = arith.muli %c0_i32_76, %c8_i32_77 : i32
    %235 = tpu.assume_multiple %234, 8 : i32
    %236 = arith.index_cast %235 : i32 to index
    %c0_78 = arith.constant 0 : index
    %237 = vector.load %arg11[%236, %c0_78] : memref<64x128xf32, #tpu.memory_space<vmem>>, vector<8x128xf32>
    %238 = arith.truncf %232 : vector<8x32xf32> to vector<8x32xbf16>
    %c0_79 = arith.constant 0 : index
    %c0_80 = arith.constant 0 : index
    %239 = vector.load %arg5[%c0_79, %c0_80] : memref<32x128xbf16, #tpu.memory_space<vmem>>, vector<32x128xbf16>
    %cst_81 = arith.constant dense<0.000000e+00> : vector<8x128xf32>
    %240 = tpu.matmul %238, %239, %cst_81 {dimension_numbers = #tpu.dot_dimension_numbers<[1], [0], [0], [1], [0, 0, 1, 1], [], []>} : vector<8x32xbf16>, vector<32x128xbf16>, vector<8x128xf32> -> vector<8x128xf32>
    %241 = arith.addf %237, %240 : vector<8x128xf32>
    %242 = vector.extract_strided_slice %241 {offsets = [0, 0], sizes = [8, 96], strides = [1, 1]} : vector<8x128xf32> to vector<8x96xf32>
    %243 = arith.negf %242 : vector<8x96xf32>
    %244 = math.exp %243 : vector<8x96xf32>
    %cst_82 = arith.constant 1.000000e+00 : f32
    %245 = vector.broadcast %cst_82 : f32 to vector<8x96xf32>
    %246 = arith.addf %245, %244 : vector<8x96xf32>
    %247 = arith.divf %245, %246 : vector<8x96xf32>
    %248 = vector.extract_strided_slice %241 {offsets = [0, 96], sizes = [8, 32], strides = [1, 1]} : vector<8x128xf32> to vector<8x32xf32>
    %249 = math.tanh %248 : vector<8x32xf32>
    %250 = vector.extract_strided_slice %247 {offsets = [0, 0], sizes = [8, 32], strides = [1, 1]} : vector<8x96xf32> to vector<8x32xf32>
    %251 = vector.extract_strided_slice %247 {offsets = [0, 32], sizes = [8, 32], strides = [1, 1]} : vector<8x96xf32> to vector<8x32xf32>
    %252 = vector.extract_strided_slice %247 {offsets = [0, 64], sizes = [8, 32], strides = [1, 1]} : vector<8x96xf32> to vector<8x32xf32>
    %253 = arith.mulf %251, %233 : vector<8x32xf32>
    %254 = arith.mulf %250, %249 : vector<8x32xf32>
    %255 = arith.addf %253, %254 : vector<8x32xf32>
    %256 = math.tanh %255 : vector<8x32xf32>
    %257 = arith.mulf %252, %256 : vector<8x32xf32>
    %c1_i32_83 = arith.constant 1 : i32
    %c8_i32_84 = arith.constant 8 : i32
    %258 = arith.muli %c1_i32_83, %c8_i32_84 : i32
    %259 = tpu.assume_multiple %258, 8 : i32
    %260 = arith.index_cast %259 : i32 to index
    %c0_85 = arith.constant 0 : index
    %261 = vector.load %arg11[%260, %c0_85] : memref<64x128xf32, #tpu.memory_space<vmem>>, vector<8x128xf32>
    %262 = arith.truncf %257 : vector<8x32xf32> to vector<8x32xbf16>
    %c0_86 = arith.constant 0 : index
    %c0_87 = arith.constant 0 : index
    %263 = vector.load %arg5[%c0_86, %c0_87] : memref<32x128xbf16, #tpu.memory_space<vmem>>, vector<32x128xbf16>
    %cst_88 = arith.constant dense<0.000000e+00> : vector<8x128xf32>
    %264 = tpu.matmul %262, %263, %cst_88 {dimension_numbers = #tpu.dot_dimension_numbers<[1], [0], [0], [1], [0, 0, 1, 1], [], []>} : vector<8x32xbf16>, vector<32x128xbf16>, vector<8x128xf32> -> vector<8x128xf32>
    %265 = arith.addf %261, %264 : vector<8x128xf32>
    %266 = vector.extract_strided_slice %265 {offsets = [0, 0], sizes = [8, 96], strides = [1, 1]} : vector<8x128xf32> to vector<8x96xf32>
    %267 = arith.negf %266 : vector<8x96xf32>
    %268 = math.exp %267 : vector<8x96xf32>
    %cst_89 = arith.constant 1.000000e+00 : f32
    %269 = vector.broadcast %cst_89 : f32 to vector<8x96xf32>
    %270 = arith.addf %269, %268 : vector<8x96xf32>
    %271 = arith.divf %269, %270 : vector<8x96xf32>
    %272 = vector.extract_strided_slice %265 {offsets = [0, 96], sizes = [8, 32], strides = [1, 1]} : vector<8x128xf32> to vector<8x32xf32>
    %273 = math.tanh %272 : vector<8x32xf32>
    %274 = vector.extract_strided_slice %271 {offsets = [0, 0], sizes = [8, 32], strides = [1, 1]} : vector<8x96xf32> to vector<8x32xf32>
    %275 = vector.extract_strided_slice %271 {offsets = [0, 32], sizes = [8, 32], strides = [1, 1]} : vector<8x96xf32> to vector<8x32xf32>
    %276 = vector.extract_strided_slice %271 {offsets = [0, 64], sizes = [8, 32], strides = [1, 1]} : vector<8x96xf32> to vector<8x32xf32>
    %277 = arith.mulf %275, %255 : vector<8x32xf32>
    %278 = arith.mulf %274, %273 : vector<8x32xf32>
    %279 = arith.addf %277, %278 : vector<8x32xf32>
    %280 = math.tanh %279 : vector<8x32xf32>
    %281 = arith.mulf %276, %280 : vector<8x32xf32>
    %c2_i32_90 = arith.constant 2 : i32
    %c8_i32_91 = arith.constant 8 : i32
    %282 = arith.muli %c2_i32_90, %c8_i32_91 : i32
    %283 = tpu.assume_multiple %282, 8 : i32
    %284 = arith.index_cast %283 : i32 to index
    %c0_92 = arith.constant 0 : index
    %285 = vector.load %arg11[%284, %c0_92] : memref<64x128xf32, #tpu.memory_space<vmem>>, vector<8x128xf32>
    %286 = arith.truncf %281 : vector<8x32xf32> to vector<8x32xbf16>
    %c0_93 = arith.constant 0 : index
    %c0_94 = arith.constant 0 : index
    %287 = vector.load %arg5[%c0_93, %c0_94] : memref<32x128xbf16, #tpu.memory_space<vmem>>, vector<32x128xbf16>
    %cst_95 = arith.constant dense<0.000000e+00> : vector<8x128xf32>
    %288 = tpu.matmul %286, %287, %cst_95 {dimension_numbers = #tpu.dot_dimension_numbers<[1], [0], [0], [1], [0, 0, 1, 1], [], []>} : vector<8x32xbf16>, vector<32x128xbf16>, vector<8x128xf32> -> vector<8x128xf32>
    %289 = arith.addf %285, %288 : vector<8x128xf32>
    %290 = vector.extract_strided_slice %289 {offsets = [0, 0], sizes = [8, 96], strides = [1, 1]} : vector<8x128xf32> to vector<8x96xf32>
    %291 = arith.negf %290 : vector<8x96xf32>
    %292 = math.exp %291 : vector<8x96xf32>
    %cst_96 = arith.constant 1.000000e+00 : f32
    %293 = vector.broadcast %cst_96 : f32 to vector<8x96xf32>
    %294 = arith.addf %293, %292 : vector<8x96xf32>
    %295 = arith.divf %293, %294 : vector<8x96xf32>
    %296 = vector.extract_strided_slice %289 {offsets = [0, 96], sizes = [8, 32], strides = [1, 1]} : vector<8x128xf32> to vector<8x32xf32>
    %297 = math.tanh %296 : vector<8x32xf32>
    %298 = vector.extract_strided_slice %295 {offsets = [0, 0], sizes = [8, 32], strides = [1, 1]} : vector<8x96xf32> to vector<8x32xf32>
    %299 = vector.extract_strided_slice %295 {offsets = [0, 32], sizes = [8, 32], strides = [1, 1]} : vector<8x96xf32> to vector<8x32xf32>
    %300 = vector.extract_strided_slice %295 {offsets = [0, 64], sizes = [8, 32], strides = [1, 1]} : vector<8x96xf32> to vector<8x32xf32>
    %301 = arith.mulf %299, %279 : vector<8x32xf32>
    %302 = arith.mulf %298, %297 : vector<8x32xf32>
    %303 = arith.addf %301, %302 : vector<8x32xf32>
    %304 = math.tanh %303 : vector<8x32xf32>
    %305 = arith.mulf %300, %304 : vector<8x32xf32>
    %c3_i32_97 = arith.constant 3 : i32
    %c8_i32_98 = arith.constant 8 : i32
    %306 = arith.muli %c3_i32_97, %c8_i32_98 : i32
    %307 = tpu.assume_multiple %306, 8 : i32
    %308 = arith.index_cast %307 : i32 to index
    %c0_99 = arith.constant 0 : index
    %309 = vector.load %arg11[%308, %c0_99] : memref<64x128xf32, #tpu.memory_space<vmem>>, vector<8x128xf32>
    %310 = arith.truncf %305 : vector<8x32xf32> to vector<8x32xbf16>
    %c0_100 = arith.constant 0 : index
    %c0_101 = arith.constant 0 : index
    %311 = vector.load %arg5[%c0_100, %c0_101] : memref<32x128xbf16, #tpu.memory_space<vmem>>, vector<32x128xbf16>
    %cst_102 = arith.constant dense<0.000000e+00> : vector<8x128xf32>
    %312 = tpu.matmul %310, %311, %cst_102 {dimension_numbers = #tpu.dot_dimension_numbers<[1], [0], [0], [1], [0, 0, 1, 1], [], []>} : vector<8x32xbf16>, vector<32x128xbf16>, vector<8x128xf32> -> vector<8x128xf32>
    %313 = arith.addf %309, %312 : vector<8x128xf32>
    %314 = vector.extract_strided_slice %313 {offsets = [0, 0], sizes = [8, 96], strides = [1, 1]} : vector<8x128xf32> to vector<8x96xf32>
    %315 = arith.negf %314 : vector<8x96xf32>
    %316 = math.exp %315 : vector<8x96xf32>
    %cst_103 = arith.constant 1.000000e+00 : f32
    %317 = vector.broadcast %cst_103 : f32 to vector<8x96xf32>
    %318 = arith.addf %317, %316 : vector<8x96xf32>
    %319 = arith.divf %317, %318 : vector<8x96xf32>
    %320 = vector.extract_strided_slice %313 {offsets = [0, 96], sizes = [8, 32], strides = [1, 1]} : vector<8x128xf32> to vector<8x32xf32>
    %321 = math.tanh %320 : vector<8x32xf32>
    %322 = vector.extract_strided_slice %319 {offsets = [0, 0], sizes = [8, 32], strides = [1, 1]} : vector<8x96xf32> to vector<8x32xf32>
    %323 = vector.extract_strided_slice %319 {offsets = [0, 32], sizes = [8, 32], strides = [1, 1]} : vector<8x96xf32> to vector<8x32xf32>
    %324 = vector.extract_strided_slice %319 {offsets = [0, 64], sizes = [8, 32], strides = [1, 1]} : vector<8x96xf32> to vector<8x32xf32>
    %325 = arith.mulf %323, %303 : vector<8x32xf32>
    %326 = arith.mulf %322, %321 : vector<8x32xf32>
    %327 = arith.addf %325, %326 : vector<8x32xf32>
    %328 = math.tanh %327 : vector<8x32xf32>
    %329 = arith.mulf %324, %328 : vector<8x32xf32>
    %c4_i32_104 = arith.constant 4 : i32
    %c8_i32_105 = arith.constant 8 : i32
    %330 = arith.muli %c4_i32_104, %c8_i32_105 : i32
    %331 = tpu.assume_multiple %330, 8 : i32
    %332 = arith.index_cast %331 : i32 to index
    %c0_106 = arith.constant 0 : index
    %333 = vector.load %arg11[%332, %c0_106] : memref<64x128xf32, #tpu.memory_space<vmem>>, vector<8x128xf32>
    %334 = arith.truncf %329 : vector<8x32xf32> to vector<8x32xbf16>
    %c0_107 = arith.constant 0 : index
    %c0_108 = arith.constant 0 : index
    %335 = vector.load %arg5[%c0_107, %c0_108] : memref<32x128xbf16, #tpu.memory_space<vmem>>, vector<32x128xbf16>
    %cst_109 = arith.constant dense<0.000000e+00> : vector<8x128xf32>
    %336 = tpu.matmul %334, %335, %cst_109 {dimension_numbers = #tpu.dot_dimension_numbers<[1], [0], [0], [1], [0, 0, 1, 1], [], []>} : vector<8x32xbf16>, vector<32x128xbf16>, vector<8x128xf32> -> vector<8x128xf32>
    %337 = arith.addf %333, %336 : vector<8x128xf32>
    %338 = vector.extract_strided_slice %337 {offsets = [0, 0], sizes = [8, 96], strides = [1, 1]} : vector<8x128xf32> to vector<8x96xf32>
    %339 = arith.negf %338 : vector<8x96xf32>
    %340 = math.exp %339 : vector<8x96xf32>
    %cst_110 = arith.constant 1.000000e+00 : f32
    %341 = vector.broadcast %cst_110 : f32 to vector<8x96xf32>
    %342 = arith.addf %341, %340 : vector<8x96xf32>
    %343 = arith.divf %341, %342 : vector<8x96xf32>
    %344 = vector.extract_strided_slice %337 {offsets = [0, 96], sizes = [8, 32], strides = [1, 1]} : vector<8x128xf32> to vector<8x32xf32>
    %345 = math.tanh %344 : vector<8x32xf32>
    %346 = vector.extract_strided_slice %343 {offsets = [0, 0], sizes = [8, 32], strides = [1, 1]} : vector<8x96xf32> to vector<8x32xf32>
    %347 = vector.extract_strided_slice %343 {offsets = [0, 32], sizes = [8, 32], strides = [1, 1]} : vector<8x96xf32> to vector<8x32xf32>
    %348 = vector.extract_strided_slice %343 {offsets = [0, 64], sizes = [8, 32], strides = [1, 1]} : vector<8x96xf32> to vector<8x32xf32>
    %349 = arith.mulf %347, %327 : vector<8x32xf32>
    %350 = arith.mulf %346, %345 : vector<8x32xf32>
    %351 = arith.addf %349, %350 : vector<8x32xf32>
    %352 = math.tanh %351 : vector<8x32xf32>
    %353 = arith.mulf %348, %352 : vector<8x32xf32>
    %c5_i32_111 = arith.constant 5 : i32
    %c8_i32_112 = arith.constant 8 : i32
    %354 = arith.muli %c5_i32_111, %c8_i32_112 : i32
    %355 = tpu.assume_multiple %354, 8 : i32
    %356 = arith.index_cast %355 : i32 to index
    %c0_113 = arith.constant 0 : index
    %357 = vector.load %arg11[%356, %c0_113] : memref<64x128xf32, #tpu.memory_space<vmem>>, vector<8x128xf32>
    %358 = arith.truncf %353 : vector<8x32xf32> to vector<8x32xbf16>
    %c0_114 = arith.constant 0 : index
    %c0_115 = arith.constant 0 : index
    %359 = vector.load %arg5[%c0_114, %c0_115] : memref<32x128xbf16, #tpu.memory_space<vmem>>, vector<32x128xbf16>
    %cst_116 = arith.constant dense<0.000000e+00> : vector<8x128xf32>
    %360 = tpu.matmul %358, %359, %cst_116 {dimension_numbers = #tpu.dot_dimension_numbers<[1], [0], [0], [1], [0, 0, 1, 1], [], []>} : vector<8x32xbf16>, vector<32x128xbf16>, vector<8x128xf32> -> vector<8x128xf32>
    %361 = arith.addf %357, %360 : vector<8x128xf32>
    %362 = vector.extract_strided_slice %361 {offsets = [0, 0], sizes = [8, 96], strides = [1, 1]} : vector<8x128xf32> to vector<8x96xf32>
    %363 = arith.negf %362 : vector<8x96xf32>
    %364 = math.exp %363 : vector<8x96xf32>
    %cst_117 = arith.constant 1.000000e+00 : f32
    %365 = vector.broadcast %cst_117 : f32 to vector<8x96xf32>
    %366 = arith.addf %365, %364 : vector<8x96xf32>
    %367 = arith.divf %365, %366 : vector<8x96xf32>
    %368 = vector.extract_strided_slice %361 {offsets = [0, 96], sizes = [8, 32], strides = [1, 1]} : vector<8x128xf32> to vector<8x32xf32>
    %369 = math.tanh %368 : vector<8x32xf32>
    %370 = vector.extract_strided_slice %367 {offsets = [0, 0], sizes = [8, 32], strides = [1, 1]} : vector<8x96xf32> to vector<8x32xf32>
    %371 = vector.extract_strided_slice %367 {offsets = [0, 32], sizes = [8, 32], strides = [1, 1]} : vector<8x96xf32> to vector<8x32xf32>
    %372 = vector.extract_strided_slice %367 {offsets = [0, 64], sizes = [8, 32], strides = [1, 1]} : vector<8x96xf32> to vector<8x32xf32>
    %373 = arith.mulf %371, %351 : vector<8x32xf32>
    %374 = arith.mulf %370, %369 : vector<8x32xf32>
    %375 = arith.addf %373, %374 : vector<8x32xf32>
    %376 = math.tanh %375 : vector<8x32xf32>
    %377 = arith.mulf %372, %376 : vector<8x32xf32>
    %c6_i32_118 = arith.constant 6 : i32
    %c8_i32_119 = arith.constant 8 : i32
    %378 = arith.muli %c6_i32_118, %c8_i32_119 : i32
    %379 = tpu.assume_multiple %378, 8 : i32
    %380 = arith.index_cast %379 : i32 to index
    %c0_120 = arith.constant 0 : index
    %381 = vector.load %arg11[%380, %c0_120] : memref<64x128xf32, #tpu.memory_space<vmem>>, vector<8x128xf32>
    %382 = arith.truncf %377 : vector<8x32xf32> to vector<8x32xbf16>
    %c0_121 = arith.constant 0 : index
    %c0_122 = arith.constant 0 : index
    %383 = vector.load %arg5[%c0_121, %c0_122] : memref<32x128xbf16, #tpu.memory_space<vmem>>, vector<32x128xbf16>
    %cst_123 = arith.constant dense<0.000000e+00> : vector<8x128xf32>
    %384 = tpu.matmul %382, %383, %cst_123 {dimension_numbers = #tpu.dot_dimension_numbers<[1], [0], [0], [1], [0, 0, 1, 1], [], []>} : vector<8x32xbf16>, vector<32x128xbf16>, vector<8x128xf32> -> vector<8x128xf32>
    %385 = arith.addf %381, %384 : vector<8x128xf32>
    %386 = vector.extract_strided_slice %385 {offsets = [0, 0], sizes = [8, 96], strides = [1, 1]} : vector<8x128xf32> to vector<8x96xf32>
    %387 = arith.negf %386 : vector<8x96xf32>
    %388 = math.exp %387 : vector<8x96xf32>
    %cst_124 = arith.constant 1.000000e+00 : f32
    %389 = vector.broadcast %cst_124 : f32 to vector<8x96xf32>
    %390 = arith.addf %389, %388 : vector<8x96xf32>
    %391 = arith.divf %389, %390 : vector<8x96xf32>
    %392 = vector.extract_strided_slice %385 {offsets = [0, 96], sizes = [8, 32], strides = [1, 1]} : vector<8x128xf32> to vector<8x32xf32>
    %393 = math.tanh %392 : vector<8x32xf32>
    %394 = vector.extract_strided_slice %391 {offsets = [0, 0], sizes = [8, 32], strides = [1, 1]} : vector<8x96xf32> to vector<8x32xf32>
    %395 = vector.extract_strided_slice %391 {offsets = [0, 32], sizes = [8, 32], strides = [1, 1]} : vector<8x96xf32> to vector<8x32xf32>
    %396 = vector.extract_strided_slice %391 {offsets = [0, 64], sizes = [8, 32], strides = [1, 1]} : vector<8x96xf32> to vector<8x32xf32>
    %397 = arith.mulf %395, %375 : vector<8x32xf32>
    %398 = arith.mulf %394, %393 : vector<8x32xf32>
    %399 = arith.addf %397, %398 : vector<8x32xf32>
    %400 = math.tanh %399 : vector<8x32xf32>
    %401 = arith.mulf %396, %400 : vector<8x32xf32>
    %c7_i32_125 = arith.constant 7 : i32
    %c8_i32_126 = arith.constant 8 : i32
    %402 = arith.muli %c7_i32_125, %c8_i32_126 : i32
    %403 = tpu.assume_multiple %402, 8 : i32
    %404 = arith.index_cast %403 : i32 to index
    %c0_127 = arith.constant 0 : index
    %405 = vector.load %arg11[%404, %c0_127] : memref<64x128xf32, #tpu.memory_space<vmem>>, vector<8x128xf32>
    %406 = arith.truncf %401 : vector<8x32xf32> to vector<8x32xbf16>
    %c0_128 = arith.constant 0 : index
    %c0_129 = arith.constant 0 : index
    %407 = vector.load %arg5[%c0_128, %c0_129] : memref<32x128xbf16, #tpu.memory_space<vmem>>, vector<32x128xbf16>
    %cst_130 = arith.constant dense<0.000000e+00> : vector<8x128xf32>
    %408 = tpu.matmul %406, %407, %cst_130 {dimension_numbers = #tpu.dot_dimension_numbers<[1], [0], [0], [1], [0, 0, 1, 1], [], []>} : vector<8x32xbf16>, vector<32x128xbf16>, vector<8x128xf32> -> vector<8x128xf32>
    %409 = arith.addf %405, %408 : vector<8x128xf32>
    %410 = vector.extract_strided_slice %409 {offsets = [0, 0], sizes = [8, 96], strides = [1, 1]} : vector<8x128xf32> to vector<8x96xf32>
    %411 = arith.negf %410 : vector<8x96xf32>
    %412 = math.exp %411 : vector<8x96xf32>
    %cst_131 = arith.constant 1.000000e+00 : f32
    %413 = vector.broadcast %cst_131 : f32 to vector<8x96xf32>
    %414 = arith.addf %413, %412 : vector<8x96xf32>
    %415 = arith.divf %413, %414 : vector<8x96xf32>
    %416 = vector.extract_strided_slice %409 {offsets = [0, 96], sizes = [8, 32], strides = [1, 1]} : vector<8x128xf32> to vector<8x32xf32>
    %417 = math.tanh %416 : vector<8x32xf32>
    %418 = vector.extract_strided_slice %415 {offsets = [0, 0], sizes = [8, 32], strides = [1, 1]} : vector<8x96xf32> to vector<8x32xf32>
    %419 = vector.extract_strided_slice %415 {offsets = [0, 32], sizes = [8, 32], strides = [1, 1]} : vector<8x96xf32> to vector<8x32xf32>
    %420 = vector.extract_strided_slice %415 {offsets = [0, 64], sizes = [8, 32], strides = [1, 1]} : vector<8x96xf32> to vector<8x32xf32>
    %421 = arith.mulf %419, %399 : vector<8x32xf32>
    %422 = arith.mulf %418, %417 : vector<8x32xf32>
    %423 = arith.addf %421, %422 : vector<8x32xf32>
    %424 = math.tanh %423 : vector<8x32xf32>
    %425 = arith.mulf %420, %424 : vector<8x32xf32>
    %c8_i32_132 = arith.constant 8 : i32
    %426 = arith.truncf %425 : vector<8x32xf32> to vector<8x32xbf16>
    %c0_133 = arith.constant 0 : index
    %c0_134 = arith.constant 0 : index
    %427 = vector.load %arg7[%c0_133, %c0_134] : memref<32x4xbf16, #tpu.memory_space<vmem>>, vector<32x4xbf16>
    %cst_135 = arith.constant dense<0.000000e+00> : vector<8x4xf32>
    %428 = tpu.matmul %426, %427, %cst_135 {dimension_numbers = #tpu.dot_dimension_numbers<[1], [0], [0], [1], [0, 0, 1, 1], [], []>} : vector<8x32xbf16>, vector<32x4xbf16>, vector<8x4xf32> -> vector<8x4xf32>
    %c0_136 = arith.constant 0 : index
    %c0_137 = arith.constant 0 : index
    %429 = vector.load %arg8[%c0_136, %c0_137] : memref<1x4xf32, #tpu.memory_space<vmem>>, vector<1x4xf32>
    %430 = vector.broadcast %429 : vector<1x4xf32> to vector<8x4xf32>
    %431 = arith.addf %428, %430 : vector<8x4xf32>
    %c0_138 = arith.constant 0 : index
    %c0_139 = arith.constant 0 : index
    %432 = vector.load %arg9[%c0_138, %c0_139] : memref<8x4xf32, #tpu.memory_space<vmem>>, vector<8x4xf32>
    tpu.vector_store %arg9[%c0_138, %c0_139], %431 {strides = array<i32>} : memref<8x4xf32, #tpu.memory_space<vmem>>, vector<8x4xf32>,
    return
  }
}

</mosaic_0001>

<bundles_post_ra>
// kernel: motion_prediction_forward.1
= control target key start
LH: loop header
LB: loop body
LE: loop exit
PB: predicated region body
PF: predicated region fallthrough
CT: control target
= control target key end

     0   :  { %vm79_vm0 = vcmask 1041408   ;;  %vm66_vm1 = vcmask 31744   ;;  %v1727_v5 = vmov 0   ;;  %s1728_s18 = smov 32   ;;  %s1729_s23 = smov 64   ;;  %vm137_vm6 = vcmask 261120   ;;  %s2070_s1 = inlined_call_operand.vmem [shape: bf16[4,128], index: 1, kind: input, shape index: {}]   ;;  %s2071_s2 = inlined_call_operand.vmem [shape: bf16[32,128], index: 2, kind: input, shape index: {}]   ;;  %s2072_s0 = inlined_call_operand.vmem [shape: bf16[64,4], index: 0, kind: input, shape index: {}]   ;;  %s2073_s3 = inlined_call_operand.vmem [shape: f32[1,128], index: 3, kind: input, shape index: {}]   ;;  %s2074_s4 = inlined_call_operand.vmem [shape: bf16[32,128], index: 4, kind: input, shape index: {}]   ;;  %s2075_s6 = inlined_call_operand.vmem [shape: f32[1,128], index: 6, kind: input, shape index: {}]   ;;  %s2076_s5 = inlined_call_operand.vmem [shape: bf16[32,128], index: 5, kind: input, shape index: {}]   ;;  %s2077_s7 = inlined_call_operand.vmem [shape: bf16[32,4], index: 7, kind: input, shape index: {}]   ;;  %s2078_s8 = inlined_call_operand.vmem [shape: f32[1,4], index: 8, kind: input, shape index: {}]   ;;  %s2079_s9 = inlined_call_operand.vmem [shape: f32[8,4], index: 9, kind: output, shape index: {}]  }
   0x1   :  { %v41_v0 = vld [vmem:[%s2070_s1] sm:$0x3]  ;;  %v1567_v1 = vld [vmem:[%s2071_s2 + $0x8] sm:$0xff] }
   0x2   :  { %v81_v2 = vsel %vm79_vm0, %v41_v0, 0  ;;  %v1562_v3 = vld [vmem:[%s2072_s0] sm:$0xff]  ;;  %147 = vmatpush.bf16.msra.mxu1 %v1567_v1  ;;  %v1569_v32 = vld [vmem:[%s2071_s2 + $0x8] sm:$0xff] }
   0x3   :  { %90 = vmatpush.bf16.msra.mxu0 %v81_v2  ;;  %v1566_v4 = vld [vmem:[%s2071_s2] sm:$0xff]  ;;  %230 = vmatpush.bf16.msra.mxu2 %v1569_v32  ;;  %v1571_v1 = vld [vmem:[%s2071_s2 + $0x8] sm:$0xff] }
   0x4   :  { %v1797_v6 = vld [vmem:[%s2073_s3] ss:$0 sm:$0xff]  ;;  %v1563_v2 = vld [vmem:[%s2072_s0 + $0x8] sm:$0xff]  ;;  %313 = vmatpush.bf16.msra.mxu3 %v1571_v1 }
   0x5   :  { %v1568_v33 = vld [vmem:[%s2071_s2] sm:$0xff] }
   0x6   :  { %1419 = vmatmul.msk.bf16.vlgmr.msra.gmra.mxu0 %vm66_vm1, %v1562_v3  ;;  %148 = vmatpush.bf16.msra.mxu1 %v1566_v4  ;;  %v1570_v3 = vld [vmem:[%s2071_s2] sm:$0xff] }
   0x7   :  { %231 = vmatpush.bf16.msra.mxu2 %v1568_v33 }
   0x8   :  { %314 = vmatpush.bf16.msra.mxu3 %v1570_v3 }
   0x9   :  { %149 = vmatmul.bf16.vlgmr.msra.gmra.mxu1 %v1727_v5 }
  0x16   :  { %1420 = vmatmul.msk.bf16.gmra.mxu0 %vm66_vm1, %v1563_v2 }
  0x83   :  { %v92_v7 = vpop.f32.mrf.mxu0 }
  0x84   :  { %v93_v8 = vadd.f32 %v1797_v6, %v92_v7 }
  0x86   :  { %v150_v9 = vpop.f32.mrf.mxu1 }
  0x87   :  { %v154_v10 = vadd.f32 %v150_v9, %v93_v8 }
  0x89   :  { %1598 = vtanh.f32 %v154_v10  ;;  %v1431_v13 = vmul.f32 -1.442695, %v154_v10 }
  0x8b   :  { %1600 = vpow2.f32 %v1431_v13  ;;  %v94_v40 = vpop.f32.mrf.mxu0 }
  0x8c   :  { %v95_v41 = vadd.f32 %v1797_v6, %v94_v40 }
  0x8e   :  { %v152_v11 = vpop.f32.mrf.mxu1 }
  0x8f   :  { %v1599_v12 = vpop.eup %1598 }
  0x90   :  { %177 = vrot.lane.b32.xlu0 %v1599_v12, %s1728_s18 }
  0x91   :  { %v1601_v14 = vpop.eup %1600 }
  0x92   :  { %v158_v15 = vadd.f32 1.0, %v1601_v14 }
  0x93   :  { %v97_v12 = vpop.f32.mrf.mxu0 }
  0x94   :  { %1602 = vrcp.f32 %v158_v15  ;;  %v170_v21 = vand.u32 2147483648, %v158_v15  ;;  %vm164_vm3 = vweird.f32 %v158_v15  ;;  %v168_v22 = vand.u32 2147483647, %v158_v15 }
  0x95   :  { %v98_v13 = vadd.f32 %v1797_v6, %v97_v12  ;;  %v1574_v12 = vld [vmem:[%s2071_s2] sm:$0xff] }
  0x96   :  { %v171_v24 = vor.u32 1.1754944e-38, %v170_v21  ;;  %vm169_vm5 = vcmp.eq.f32.partialorder %v168_v22, 8.507059e+37 }
  0x9a   :  { %v1603_v16 = vpop.eup %1602 }
  0x9b   :  { %v160_v17 = vmul.f32 %v1603_v16, %v158_v15  ;;  %vm165_vm2 = vweird.f32 %v1603_v16 }
  0x9c   :  { %vm166_vm4 = vmor %vm164_vm3, %vm165_vm2 }
  0x9d   :  { %v161_v18 = vsub.f32 1.0, %v160_v17 }
  0x9f   :  { %v162_v19 = vmul.f32 %v1603_v16, %v161_v18 }
  0xa1   :  { %v163_v20 = vadd.f32 %v1603_v16, %v162_v19 }
  0xa3   :  { %v167_v23 = vsel %vm166_vm4, %v1603_v16, %v163_v20 }
  0xa4   :  { %v172_v26 = vsel %vm169_vm5, %v171_v24, %v167_v23 }
  0xa5   :  { %v175_v28 = vmul.f32 0.0, %v172_v26 }
 0x102   :  { %v178_v25 = vpop.permute.xlu0 %177 }
 0x103   :  { %v180_v27 = vmul.f32 %v178_v25, %v172_v26 }
 0x105   :  { %182 = vrot.lane.b32.xlu0 %v180_v27, %s1728_s18 }
 0x177   :  { %v183_v29 = vpop.permute.xlu0 %182 }
 0x178   :  { %v185_v30 = vadd.f32 %v183_v29, %v175_v28 }
 0x17a   :  { %1604 = vtanh.f32 %v185_v30 }
 0x180   :  { %v1605_v31 = vpop.eup %1604 }
 0x181   :  { %188 = vrot.lane.b32.xlu1 %v1605_v31, %s1728_s18 }
 0x1f3   :  { %v189_v34 = vpop.permute.xlu1 %188 }
 0x1f4   :  { %v191_v35 = vmul.f32 %v189_v34, %v172_v26 }
 0x1f6   :  { %v1809_v36 = vpack.c.bf16 %v191_v35, %v191_v35 }
 0x1f8   :  { %v205_v37 = vunpack.c.l.b16 %v1809_v36 }
 0x1fa   :  { %v206_v38 = vpack.c.b16 %v205_v37, %v205_v37 }
 0x1fc   :  { %207 = vrot.lane.b32.xlu1 %v206_v38, %s1729_s23  ;;  %v1573_v38 = vld [vmem:[%s2071_s2 + $0x8] sm:$0xff] }
 0x1fd   :  { %396 = vmatpush.bf16.msrb.mxu1 %v1573_v38 }
 0x26e   :  { %v208_v39 = vpop.permute.xlu1 %207 }
 0x26f   :  { %1440 = vmatmul.msk.bf16.vlgmr.msra.gmra.mxu2 %vm137_vm6, %v208_v39  ;;  %v1572_v39 = vld [vmem:[%s2071_s2] sm:$0xff] }
 0x270   :  { %397 = vmatpush.bf16.msrb.mxu1 %v1572_v39 }
 0x2f2   :  { %v233_v42 = vpop.f32.mrf.mxu2 }
 0x2f3   :  { %v237_v43 = vadd.f32 %v233_v42, %v95_v41 }
 0x2f5   :  { %1606 = vtanh.f32 %v237_v43  ;;  %v1441_v46 = vmul.f32 -1.442695, %v237_v43 }
 0x2f7   :  { %1608 = vpow2.f32 %v1441_v46  ;;  %v99_v46 = vpop.f32.mrf.mxu0 }
 0x2fa   :  { %v235_v44 = vpop.f32.mrf.mxu2 }
 0x2fb   :  { %v1607_v45 = vpop.eup %1606 }
 0x2fc   :  { %260 = vrot.lane.b32.xlu2 %v1607_v45, %s1728_s18 }
 0x2fd   :  { %v1609_v47 = vpop.eup %1608 }
 0x2fe   :  { %v241_v48 = vadd.f32 1.0, %v1609_v47  ;;  %v100_v47 = vadd.f32 %v1797_v6, %v99_v46  ;;  %v1577_v46 = vld [vmem:[%s2071_s2 + $0x8] sm:$0xff] }
 0x2ff   :  { %562 = vmatpush.bf16.msrb.mxu3 %v1577_v46 }
 0x300   :  { %1610 = vrcp.f32 %v241_v48  ;;  %v253_v54 = vand.u32 2147483648, %v241_v48  ;;  %vm247_vm8 = vweird.f32 %v241_v48  ;;  %v251_v55 = vand.u32 2147483647, %v241_v48 }
 0x302   :  { %v254_v57 = vor.u32 1.1754944e-38, %v253_v54  ;;  %vm252_vm10 = vcmp.eq.f32.partialorder %v251_v55, 8.507059e+37 }
 0x306   :  { %v1611_v49 = vpop.eup %1610 }
 0x307   :  { %v243_v50 = vmul.f32 %v1611_v49, %v241_v48  ;;  %vm248_vm7 = vweird.f32 %v1611_v49 }
 0x308   :  { %vm249_vm9 = vmor %vm247_vm8, %vm248_vm7 }
 0x309   :  { %v244_v51 = vsub.f32 1.0, %v243_v50 }
 0x30b   :  { %v245_v52 = vmul.f32 %v1611_v49, %v244_v51 }
 0x30d   :  { %v246_v53 = vadd.f32 %v1611_v49, %v245_v52 }
 0x30f   :  { %v250_v56 = vsel %vm249_vm9, %v1611_v49, %v246_v53 }
 0x310   :  { %v255_v59 = vsel %vm252_vm10, %v254_v57, %v250_v56 }
 0x311   :  { %v258_v61 = vmul.f32 %v255_v59, %v185_v30 }
 0x356   :  { %v261_v58 = vpop.permute.xlu2 %260 }
 0x357   :  { %v263_v60 = vmul.f32 %v261_v58, %v255_v59 }
 0x359   :  { %265 = vrot.lane.b32.xlu2 %v263_v60, %s1728_s18 }
 0x3b3   :  { %v266_v62 = vpop.permute.xlu2 %265 }
 0x3b4   :  { %v268_v63 = vadd.f32 %v266_v62, %v258_v61 }
 0x3b6   :  { %1612 = vtanh.f32 %v268_v63 }
 0x3bc   :  { %v1613_v0 = vpop.eup %1612 }
 0x3bd   :  { %271 = vrot.lane.b32.xlu0 %v1613_v0, %s1728_s18 }
 0x42f   :  { %v272_v4 = vpop.permute.xlu0 %271 }
 0x430   :  { %v274_v7 = vmul.f32 %v272_v4, %v255_v59 }
 0x432   :  { %v1828_v8 = vpack.c.bf16 %v274_v7, %v274_v7 }
 0x434   :  { %v288_v9 = vunpack.c.l.b16 %v1828_v8 }
 0x436   :  { %v289_v10 = vpack.c.b16 %v288_v9, %v288_v9 }
 0x438   :  { %290 = vrot.lane.b32.xlu1 %v289_v10, %s1729_s23  ;;  %v1575_v10 = vld [vmem:[%s2071_s2 + $0x8] sm:$0xff] }
 0x439   :  { %479 = vmatpush.bf16.msrb.mxu2 %v1575_v10 }
 0x43d   :  { %480 = vmatpush.bf16.msrb.mxu2 %v1574_v12 }
 0x4aa   :  { %v291_v11 = vpop.permute.xlu1 %290 }
 0x4ab   :  { %1450 = vmatmul.msk.bf16.vlgmr.msra.gmra.mxu3 %vm137_vm6, %v291_v11  ;;  %v1564_v11 = vld [vmem:[%s2072_s0 + $0x10] sm:$0xff] }
 0x4ac   :  { %1421 = vmatmul.msk.bf16.gmra.mxu0 %vm66_vm1, %v1564_v11 }
 0x52e   :  { %v316_v14 = vpop.f32.mrf.mxu3 }
 0x52f   :  { %v320_v15 = vadd.f32 %v316_v14, %v98_v13 }
 0x531   :  { %1614 = vtanh.f32 %v320_v15  ;;  %v1451_v18 = vmul.f32 -1.442695, %v320_v15 }
 0x533   :  { %1616 = vpow2.f32 %v1451_v18 }
 0x536   :  { %v318_v16 = vpop.f32.mrf.mxu3 }
 0x537   :  { %v1615_v17 = vpop.eup %1614 }
 0x538   :  { %343 = vrot.lane.b32.xlu2 %v1615_v17, %s1728_s18 }
 0x539   :  { %v1617_v19 = vpop.eup %1616 }
 0x53a   :  { %v324_v20 = vadd.f32 1.0, %v1617_v19  ;;  %v102_v19 = vpop.f32.mrf.mxu0 }
 0x53c   :  { %1618 = vrcp.f32 %v324_v20  ;;  %v336_v26 = vand.u32 2147483648, %v324_v20  ;;  %vm330_vm12 = vweird.f32 %v324_v20  ;;  %v334_v27 = vand.u32 2147483647, %v324_v20 }
 0x53e   :  { %v337_v29 = vor.u32 1.1754944e-38, %v336_v26  ;;  %vm335_vm14 = vcmp.eq.f32.partialorder %v334_v27, 8.507059e+37 }
 0x542   :  { %v1619_v21 = vpop.eup %1618 }
 0x543   :  { %v326_v22 = vmul.f32 %v1619_v21, %v324_v20  ;;  %vm331_vm11 = vweird.f32 %v1619_v21  ;;  %v103_v20 = vadd.f32 %v1797_v6, %v102_v19 }
 0x544   :  { %vm332_vm13 = vmor %vm330_vm12, %vm331_vm11 }
 0x545   :  { %v327_v23 = vsub.f32 1.0, %v326_v22 }
 0x547   :  { %v328_v24 = vmul.f32 %v1619_v21, %v327_v23 }
 0x549   :  { %v329_v25 = vadd.f32 %v1619_v21, %v328_v24 }
 0x54b   :  { %v333_v28 = vsel %vm332_vm13, %v1619_v21, %v329_v25  ;;  %vm197_vm13 = vcmask 257024  }
 0x54c   :  { %v338_v31 = vsel %vm335_vm14, %v337_v29, %v333_v28 }
 0x54d   :  { %v341_v33 = vmul.f32 %v338_v31, %v268_v63 }
 0x592   :  { %v344_v30 = vpop.permute.xlu2 %343 }
 0x593   :  { %v346_v32 = vmul.f32 %v344_v30, %v338_v31 }
 0x595   :  { %348 = vrot.lane.b32.xlu0 %v346_v32, %s1728_s18 }
 0x607   :  { %v349_v34 = vpop.permute.xlu0 %348 }
 0x608   :  { %v351_v35 = vadd.f32 %v349_v34, %v341_v33 }
 0x60a   :  { %1620 = vtanh.f32 %v351_v35 }
 0x610   :  { %v1621_v37 = vpop.eup %1620 }
 0x611   :  { %354 = vrot.lane.b32.xlu1 %v1621_v37, %s1728_s18 }
 0x683   :  { %v355_v40 = vpop.permute.xlu1 %354 }
 0x684   :  { %v357_v41 = vmul.f32 %v355_v40, %v338_v31 }
 0x686   :  { %v1843_v42 = vpack.c.bf16 %v357_v41, %v357_v41 }
 0x688   :  { %v371_v43 = vunpack.c.l.b16 %v1843_v42 }
 0x68a   :  { %v372_v44 = vpack.c.b16 %v371_v43, %v371_v43 }
 0x68c   :  { %373 = vrot.lane.b32.xlu2 %v372_v44, %s1729_s23 }
 0x6e6   :  { %v374_v45 = vpop.permute.xlu2 %373 }
 0x6e7   :  { %1460 = vmatmul.msk.bf16.vlgmr.msrb.gmra.mxu1 %vm137_vm6, %v374_v45 }
 0x764   :  { %v399_v48 = vpop.f32.mrf.mxu1 }
 0x765   :  { %v403_v49 = vadd.f32 %v399_v48, %v100_v47  ;;  %v1576_v47 = vld [vmem:[%s2071_s2] sm:$0xff] }
 0x766   :  { %563 = vmatpush.bf16.msrb.mxu3 %v1576_v47 }
 0x767   :  { %1622 = vtanh.f32 %v403_v49  ;;  %v1461_v52 = vmul.f32 -1.442695, %v403_v49 }
 0x769   :  { %1624 = vpow2.f32 %v1461_v52 }
 0x76c   :  { %v401_v50 = vpop.f32.mrf.mxu1 }
 0x76d   :  { %v1623_v51 = vpop.eup %1622 }
 0x76e   :  { %426 = vrot.lane.b32.xlu0 %v1623_v51, %s1728_s18 }
 0x76f   :  { %v1625_v53 = vpop.eup %1624 }
 0x770   :  { %v407_v54 = vadd.f32 1.0, %v1625_v53 }
 0x772   :  { %1626 = vrcp.f32 %v407_v54  ;;  %v419_v60 = vand.u32 2147483648, %v407_v54  ;;  %vm413_vm0 = vweird.f32 %v407_v54  ;;  %v417_v61 = vand.u32 2147483647, %v407_v54 }
 0x774   :  { %v420_v63 = vor.u32 1.1754944e-38, %v419_v60  ;;  %vm418_vm3 = vcmp.eq.f32.partialorder %v417_v61, 8.507059e+37 }
 0x778   :  { %v1627_v55 = vpop.eup %1626 }
 0x779   :  { %v409_v56 = vmul.f32 %v1627_v55, %v407_v54  ;;  %vm414_vm15 = vweird.f32 %v1627_v55  ;;  %v104_v54 = vpop.f32.mrf.mxu0 }
 0x77a   :  { %vm415_vm2 = vmor %vm413_vm0, %vm414_vm15 }
 0x77b   :  { %v410_v57 = vsub.f32 1.0, %v409_v56 }
 0x77d   :  { %v411_v58 = vmul.f32 %v1627_v55, %v410_v57 }
 0x77f   :  { %v412_v59 = vadd.f32 %v1627_v55, %v411_v58 }
 0x781   :  { %v416_v62 = vsel %vm415_vm2, %v1627_v55, %v412_v59  ;;  %v105_v55 = vadd.f32 %v1797_v6, %v104_v54 }
 0x782   :  { %v421_v1 = vsel %vm418_vm3, %v420_v63, %v416_v62 }
 0x783   :  { %v424_v3 = vmul.f32 %v421_v1, %v351_v35 }
 0x7e0   :  { %v427_v0 = vpop.permute.xlu0 %426 }
 0x7e1   :  { %v429_v2 = vmul.f32 %v427_v0, %v421_v1 }
 0x7e3   :  { %431 = vrot.lane.b32.xlu1 %v429_v2, %s1728_s18 }
 0x855   :  { %v432_v4 = vpop.permute.xlu1 %431 }
 0x856   :  { %v434_v7 = vadd.f32 %v432_v4, %v424_v3 }
 0x858   :  { %1628 = vtanh.f32 %v434_v7 }
 0x85e   :  { %v1629_v9 = vpop.eup %1628 }
 0x85f   :  { %437 = vrot.lane.b32.xlu2 %v1629_v9, %s1728_s18 }
 0x8b9   :  { %v438_v13 = vpop.permute.xlu2 %437 }
 0x8ba   :  { %v440_v14 = vmul.f32 %v438_v13, %v421_v1 }
 0x8bc   :  { %v1862_v15 = vpack.c.bf16 %v440_v14, %v440_v14 }
 0x8be   :  { %v454_v16 = vunpack.c.l.b16 %v1862_v15 }
 0x8c0   :  { %v455_v17 = vpack.c.b16 %v454_v16, %v454_v16 }
 0x8c2   :  { %456 = vrot.lane.b32.xlu0 %v455_v17, %s1729_s23 }
 0x934   :  { %v457_v18 = vpop.permute.xlu0 %456 }
 0x935   :  { %1470 = vmatmul.msk.bf16.vlgmr.msrb.gmra.mxu2 %vm137_vm6, %v457_v18 }
 0x9b8   :  { %v482_v21 = vpop.f32.mrf.mxu2 }
 0x9b9   :  { %v486_v22 = vadd.f32 %v482_v21, %v103_v20  ;;  %v1586_v20 = vld [vmem:[%s2074_s4] sm:$0xff]  ;;  %v1579_v21 = vld [vmem:[%s2071_s2 + $0x8] sm:$0xff] }
 0x9ba   :  { %645 = vmatpush.bf16.msra.mxu1 %v1579_v21 }
 0x9bb   :  { %1630 = vtanh.f32 %v486_v22  ;;  %v1471_v25 = vmul.f32 -1.442695, %v486_v22  ;;  %v1565_v22 = vld [vmem:[%s2072_s0 + $0x18] sm:$0xff] }
 0x9bc   :  { %1422 = vmatmul.msk.bf16.gmra.mxu0 %vm66_vm1, %v1565_v22 }
 0x9bd   :  { %1632 = vpow2.f32 %v1471_v25 }
 0x9c0   :  { %v484_v23 = vpop.f32.mrf.mxu2 }
 0x9c1   :  { %v1631_v24 = vpop.eup %1630 }
 0x9c2   :  { %509 = vrot.lane.b32.xlu1 %v1631_v24, %s1728_s18 }
 0x9c3   :  { %v1633_v26 = vpop.eup %1632 }
 0x9c4   :  { %v490_v27 = vadd.f32 1.0, %v1633_v26 }
 0x9c6   :  { %1634 = vrcp.f32 %v490_v27  ;;  %v502_v33 = vand.u32 2147483648, %v490_v27  ;;  %vm496_vm5 = vweird.f32 %v490_v27  ;;  %v500_v34 = vand.u32 2147483647, %v490_v27 }
 0x9c8   :  { %v503_v37 = vor.u32 1.1754944e-38, %v502_v33  ;;  %vm501_vm8 = vcmp.eq.f32.partialorder %v500_v34, 8.507059e+37 }
 0x9cc   :  { %v1635_v28 = vpop.eup %1634 }
 0x9cd   :  { %v492_v29 = vmul.f32 %v1635_v28, %v490_v27  ;;  %vm497_vm4 = vweird.f32 %v1635_v28 }
 0x9ce   :  { %vm498_vm7 = vmor %vm496_vm5, %vm497_vm4 }
 0x9cf   :  { %v493_v30 = vsub.f32 1.0, %v492_v29 }
 0x9d1   :  { %v494_v31 = vmul.f32 %v1635_v28, %v493_v30  ;;  %v1919_v30 = vld [vmem:[%s2076_s5 + $0x8] sm:$0xff] }
 0x9d2   :  { %1018 = vmatpush.bf16.msrb.mxu0 %v1919_v30 }
 0x9d3   :  { %v495_v32 = vadd.f32 %v1635_v28, %v494_v31  ;;  %v1925_v31 = vld [vmem:[%s2076_s5] sm:$0xff] }
 0x9d5   :  { %v499_v35 = vsel %vm498_vm7, %v1635_v28, %v495_v32 }
 0x9d6   :  { %v504_v39 = vsel %vm501_vm8, %v503_v37, %v499_v35  ;;  %1019 = vmatpush.bf16.msrb.mxu0 %v1925_v31 }
 0x9d7   :  { %v507_v41 = vmul.f32 %v504_v39, %v434_v7 }
 0x9da   :  { %1195 = vmatpush.bf16.msra.mxu0 %v1919_v30 }
 0x9de   :  { %1196 = vmatpush.bf16.msra.mxu0 %v1925_v31 }
 0xa34   :  { %v510_v38 = vpop.permute.xlu1 %509 }
 0xa35   :  { %v512_v40 = vmul.f32 %v510_v38, %v504_v39 }
 0xa37   :  { %514 = vrot.lane.b32.xlu2 %v512_v40, %s1728_s18  ;;  %v1943_v40 = vld [vmem:[%s2075_s6] ss:$0 sm:$0xff] }
 0xa39   :  { %v107_v33 = vpop.f32.mrf.mxu0 }
 0xa3a   :  { %v108_v34 = vadd.f32 %v1797_v6, %v107_v33 }
 0xa91   :  { %v515_v43 = vpop.permute.xlu2 %514 }
 0xa92   :  { %v517_v44 = vadd.f32 %v515_v43, %v507_v41 }
 0xa94   :  { %1636 = vtanh.f32 %v517_v44 }
 0xa9a   :  { %v1637_v45 = vpop.eup %1636 }
 0xa9b   :  { %520 = vrot.lane.b32.xlu0 %v1637_v45, %s1728_s18 }
 0xb0d   :  { %v521_v48 = vpop.permute.xlu0 %520 }
 0xb0e   :  { %v523_v49 = vmul.f32 %v521_v48, %v504_v39 }
 0xb10   :  { %v1877_v50 = vpack.c.bf16 %v523_v49, %v523_v49 }
 0xb12   :  { %v537_v51 = vunpack.c.l.b16 %v1877_v50 }
 0xb14   :  { %v538_v52 = vpack.c.b16 %v537_v51, %v537_v51 }
 0xb16   :  { %539 = vrot.lane.b32.xlu1 %v538_v52, %s1729_s23 }
 0xb88   :  { %v540_v53 = vpop.permute.xlu1 %539 }
 0xb89   :  { %1480 = vmatmul.msk.bf16.vlgmr.msrb.gmra.mxu3 %vm137_vm6, %v540_v53 }
 0xc0c   :  { %v565_v56 = vpop.f32.mrf.mxu3 }
 0xc0d   :  { %v569_v57 = vadd.f32 %v565_v56, %v105_v55 }
 0xc0f   :  { %1638 = vtanh.f32 %v569_v57  ;;  %v1481_v60 = vmul.f32 -1.442695, %v569_v57 }
 0xc11   :  { %1640 = vpow2.f32 %v1481_v60 }
 0xc14   :  { %v567_v58 = vpop.f32.mrf.mxu3 }
 0xc15   :  { %v1639_v59 = vpop.eup %1638 }
 0xc16   :  { %592 = vrot.lane.b32.xlu2 %v1639_v59, %s1728_s18 }
 0xc17   :  { %v1641_v61 = vpop.eup %1640 }
 0xc18   :  { %v573_v62 = vadd.f32 1.0, %v1641_v61 }
 0xc1a   :  { %1642 = vrcp.f32 %v573_v62  ;;  %v585_v4 = vand.u32 2147483648, %v573_v62  ;;  %vm579_vm10 = vweird.f32 %v573_v62  ;;  %v583_v7 = vand.u32 2147483647, %v573_v62 }
 0xc1c   :  { %v586_v10 = vor.u32 1.1754944e-38, %v585_v4  ;;  %vm584_vm12 = vcmp.eq.f32.partialorder %v583_v7, 8.507059e+37 }
 0xc20   :  { %v1643_v63 = vpop.eup %1642 }
 0xc21   :  { %v575_v0 = vmul.f32 %v1643_v63, %v573_v62  ;;  %vm580_vm9 = vweird.f32 %v1643_v63 }
 0xc22   :  { %vm581_vm11 = vmor %vm579_vm10, %vm580_vm9 }
 0xc23   :  { %v576_v1 = vsub.f32 1.0, %v575_v0 }
 0xc25   :  { %v577_v2 = vmul.f32 %v1643_v63, %v576_v1 }
 0xc27   :  { %v578_v3 = vadd.f32 %v1643_v63, %v577_v2 }
 0xc29   :  { %v582_v9 = vsel %vm581_vm11, %v1643_v63, %v578_v3 }
 0xc2a   :  { %v587_v12 = vsel %vm584_vm12, %v586_v10, %v582_v9 }
 0xc2b   :  { %v590_v14 = vmul.f32 %v587_v12, %v517_v44 }
 0xc70   :  { %v593_v11 = vpop.permute.xlu2 %592 }
 0xc71   :  { %v595_v13 = vmul.f32 %v593_v11, %v587_v12 }
 0xc73   :  { %597 = vrot.lane.b32.xlu0 %v595_v13, %s1728_s18 }
 0xc7b   :  { %194 = vrot.lane.b32.xlu0 %v1809_v36, %s1729_s23  ;;  %v1587_v36 = vld [vmem:[%s2074_s4 + $0x8] sm:$0xff] }
 0xc7c   :  { %846 = vmatpush.bf16.msra.mxu3 %v1587_v36 }
 0xc80   :  { %847 = vmatpush.bf16.msra.mxu3 %v1586_v20 }
 0xce5   :  { %v598_v16 = vpop.permute.xlu0 %597 }
 0xce6   :  { %v1887_v17 = vadd.f32 %v598_v16, %v590_v14 }
 0xce8   :  { %1644 = vtanh.f32 %v1887_v17 }
 0xced   :  { %v195_v18 = vpop.permute.xlu0 %194 }
 0xcee   :  { %v1645_v19 = vpop.eup %1644  ;;  %198 = vst.msk [vmem:[#allocation2] sm:$0xf] %vm197_vm13, %v195_v18 }
 0xcef   :  { %603 = vrot.lane.b32.xlu1 %v1645_v19, %s1728_s18 }
 0xcf7   :  { %277 = vrot.lane.b32.xlu1 %v1828_v8, %s1729_s23  ;;  %v1578_v8 = vld [vmem:[%s2071_s2] sm:$0xff] }
 0xcf8   :  { %646 = vmatpush.bf16.msra.mxu1 %v1578_v8 }
 0xcfc   :  { %900 = vmatpush.bf16.msrb.mxu1 %v1919_v30 }
 0xd00   :  { %901 = vmatpush.bf16.msrb.mxu1 %v1925_v31 }
 0xd61   :  { %v604_v23 = vpop.permute.xlu1 %603 }
 0xd62   :  { %v606_v24 = vmul.f32 %v604_v23, %v587_v12 }
 0xd64   :  { %v1910_v25 = vpack.c.bf16 %v606_v24, %v606_v24  ;;  %v1580_v24 = vld [vmem:[%s2071_s2] sm:$0xff] }
 0xd66   :  { %v620_v26 = vunpack.c.l.b16 %v1910_v25 }
 0xd68   :  { %v621_v27 = vpack.c.b16 %v620_v26, %v620_v26 }
 0xd69   :  { %v278_v28 = vpop.permute.xlu1 %277 }
 0xd6a   :  { %281 = vst.msk [vmem:[#allocation2 + $0x4] sm:$0xf] %vm197_vm13, %v278_v28  ;;  %622 = vrot.lane.b32.xlu2 %v621_v27, %s1729_s23 }
 0xd71   :  { %v1582_v29 = vld [vmem:[#allocation2] sm:$0xff] }
 0xd72   :  { %1526 = vmatmul.msk.bf16.vlgmr.msra.gmra.mxu3 %vm137_vm6, %v1582_v29 }
 0xdc4   :  { %v623_v32 = vpop.permute.xlu2 %622 }
 0xdc5   :  { %1490 = vmatmul.msk.bf16.vlgmr.msra.gmra.mxu1 %vm137_vm6, %v623_v32 }
 0xdc6   :  { %1077 = vmatpush.bf16.msra.mxu1 %v1919_v30 }
 0xdca   :  { %1078 = vmatpush.bf16.msra.mxu1 %v1925_v31 }
 0xdd5   :  { %902 = vmatmul.bf16.vlgmr.msrb.gmra.mxu1 %v1727_v5 }
 0xdd6   :  { %1254 = vmatpush.bf16.msrb.mxu1 %v1919_v30 }
 0xdda   :  { %1255 = vmatpush.bf16.msrb.mxu1 %v1925_v31 }
 0xdf5   :  { %v849_v5 = vpop.f32.mrf.mxu3 }
 0xdf6   :  { %v850_v41 = vadd.f32 %v1943_v40, %v849_v5 }
 0xe42   :  { %v648_v35 = vpop.f32.mrf.mxu1 }
 0xe43   :  { %v652_v37 = vadd.f32 %v648_v35, %v108_v34 }
 0xe45   :  { %1646 = vtanh.f32 %v652_v37  ;;  %v1491_v46 = vmul.f32 -1.442695, %v652_v37 }
 0xe4a   :  { %v650_v38 = vpop.f32.mrf.mxu1 }
 0xe4b   :  { %v1647_v39 = vpop.eup %1646 }
 0xe4c   :  { %675 = vrot.lane.b32.xlu2 %v1647_v39, %s1728_s18 }
 0xe52   :  { %v903_v43 = vpop.f32.mrf.mxu1 }
 0xe53   :  { %v907_v44 = vadd.f32 %v903_v43, %v850_v41  ;;  %v851_v41 = vpop.f32.mrf.mxu3 }
 0xe54   :  { %v852_v43 = vadd.f32 %v1943_v40, %v851_v41 }
 0xe55   :  { %1648 = vtanh.f32 %v907_v44  ;;  %v1538_v56 = vmul.f32 -1.442695, %v907_v44 }
 0xe56   :  { %1650 = vpow2.f32 %v1491_v46 }
 0xe5a   :  { %v905_v45 = vpop.f32.mrf.mxu1 }
 0xe5b   :  { %v1649_v6 = vpop.eup %1648 }
 0xe5c   :  { %930 = vrot.lane.b32.xlu0 %v1649_v6, %s1728_s18  ;;  %v1651_v47 = vpop.eup %1650 }
 0xe5d   :  { %v656_v48 = vadd.f32 1.0, %v1651_v47 }
 0xe5f   :  { %1652 = vrcp.f32 %v656_v48  ;;  %v668_v55 = vand.u32 2147483648, %v656_v48  ;;  %vm662_vm15 = vweird.f32 %v656_v48  ;;  %v666_v57 = vand.u32 2147483647, %v656_v48 }
 0xe60   :  { %1654 = vpow2.f32 %v1538_v56 }
 0xe61   :  { %v669_v59 = vor.u32 1.1754944e-38, %v668_v55  ;;  %vm667_vm2 = vcmp.eq.f32.partialorder %v666_v57, 8.507059e+37 }
 0xe65   :  { %v1653_v49 = vpop.eup %1652 }
 0xe66   :  { %v658_v51 = vmul.f32 %v1653_v49, %v656_v48  ;;  %vm663_vm14 = vweird.f32 %v1653_v49  ;;  %v1655_v63 = vpop.eup %1654 }
 0xe67   :  { %vm664_vm0 = vmor %vm662_vm15, %vm663_vm14  ;;  %v911_v0 = vadd.f32 1.0, %v1655_v63 }
 0xe68   :  { %v659_v52 = vsub.f32 1.0, %v658_v51 }
 0xe69   :  { %1656 = vrcp.f32 %v911_v0  ;;  %v923_v9 = vand.u32 2147483648, %v911_v0  ;;  %vm917_vm4 = vweird.f32 %v911_v0  ;;  %v921_v10 = vand.u32 2147483647, %v911_v0 }
 0xe6a   :  { %v660_v53 = vmul.f32 %v1653_v49, %v659_v52 }
 0xe6b   :  { %v924_v12 = vor.u32 1.1754944e-38, %v923_v9  ;;  %vm922_vm7 = vcmp.eq.f32.partialorder %v921_v10, 8.507059e+37  ;;  %v1993_v9 = vpop.f32.mrf.mxu0 }
 0xe6c   :  { %v661_v54 = vadd.f32 %v1653_v49, %v660_v53 }
 0xe6e   :  { %v665_v58 = vsel %vm664_vm0, %v1653_v49, %v661_v54 }
 0xe6f   :  { %v670_v61 = vsel %vm667_vm2, %v669_v59, %v665_v58  ;;  %v1657_v1 = vpop.eup %1656 }
 0xe70   :  { %v913_v2 = vmul.f32 %v1657_v1, %v911_v0  ;;  %vm918_vm3 = vweird.f32 %v1657_v1  ;;  %v673_v18 = vmul.f32 %v670_v61, %v1887_v17  ;;  %v1581_v17 = vld [vmem:[%s2071_s2 + $0x8] sm:$0xff] }
 0xe71   :  { %vm919_vm5 = vmor %vm917_vm4, %vm918_vm3  ;;  %728 = vmatpush.bf16.msra.mxu2 %v1581_v17 }
 0xe72   :  { %v914_v3 = vsub.f32 1.0, %v913_v2 }
 0xe74   :  { %v915_v4 = vmul.f32 %v1657_v1, %v914_v3 }
 0xe75   :  { %729 = vmatpush.bf16.msra.mxu2 %v1580_v24 }
 0xe76   :  { %v916_v7 = vadd.f32 %v1657_v1, %v915_v4 }
 0xe78   :  { %v920_v11 = vsel %vm919_vm5, %v1657_v1, %v916_v7 }
 0xe79   :  { %v925_v14 = vsel %vm922_vm7, %v924_v12, %v920_v11  ;;  %959 = vmatpush.bf16.msrb.mxu2 %v1919_v30 }
 0xe7a   :  { %v928_v21 = vmul.f32 0.0, %v925_v14 }
 0xe7d   :  { %960 = vmatpush.bf16.msrb.mxu2 %v1925_v31 }
 0xea6   :  { %v676_v60 = vpop.permute.xlu2 %675 }
 0xea7   :  { %v678_v62 = vmul.f32 %v676_v60, %v670_v61 }
 0xea9   :  { %680 = vrot.lane.b32.xlu1 %v678_v62, %s1728_s18 }
 0xece   :  { %v931_v13 = vpop.permute.xlu0 %930 }
 0xecf   :  { %v933_v16 = vmul.f32 %v931_v13, %v925_v14 }
 0xed1   :  { %935 = vrot.lane.b32.xlu2 %v933_v16, %s1728_s18 }
 0xf1b   :  { %v681_v19 = vpop.permute.xlu1 %680 }
 0xf1c   :  { %v1950_v36 = vadd.f32 %v681_v19, %v673_v18 }
 0xf1e   :  { %1658 = vtanh.f32 %v1950_v36 }
 0xf24   :  { %v1659_v20 = vpop.eup %1658 }
 0xf25   :  { %686 = vrot.lane.b32.xlu0 %v1659_v20, %s1728_s18 }
 0xf2b   :  { %v936_v22 = vpop.permute.xlu2 %935 }
 0xf2c   :  { %v1954_v8 = vadd.f32 %v936_v22, %v928_v21 }
 0xf2e   :  { %1660 = vtanh.f32 %v1954_v8 }
 0xf34   :  { %v1661_v23 = vpop.eup %1660 }
 0xf35   :  { %941 = vrot.lane.b32.xlu1 %v1661_v23, %s1728_s18 }
 0xf97   :  { %v687_v26 = vpop.permute.xlu0 %686 }
 0xf98   :  { %v689_v27 = vmul.f32 %v687_v26, %v670_v61 }
 0xf9a   :  { %v1966_v28 = vpack.c.bf16 %v689_v27, %v689_v27 }
 0xf9c   :  { %v703_v29 = vunpack.c.l.b16 %v1966_v28 }
 0xf9e   :  { %v704_v32 = vpack.c.b16 %v703_v29, %v703_v29 }
 0xfa0   :  { %705 = vrot.lane.b32.xlu2 %v704_v32, %s1729_s23 }
 0xfa7   :  { %v942_v33 = vpop.permute.xlu1 %941 }
 0xfa8   :  { %v944_v34 = vmul.f32 %v942_v33, %v925_v14 }
 0xfaa   :  { %v946_v35 = vpack.c.bf16 %v944_v34, %v944_v34 }
 0xfac   :  { %948 = vrot.lane.b32.xlu0 %v946_v35, %s1729_s23 }
 0xffa   :  { %v706_v37 = vpop.permute.xlu2 %705 }
 0xffb   :  { %1500 = vmatmul.msk.bf16.vlgmr.msra.gmra.mxu2 %vm137_vm6, %v706_v37 }
 0xffc   :  { %1136 = vmatpush.bf16.msra.mxu2 %v1919_v30 }
0x1000   :  { %1137 = vmatpush.bf16.msra.mxu2 %v1925_v31 }
0x101e   :  { %v949_v38 = vpop.permute.xlu0 %948 }
0x101f   :  { %1539 = vmatmul.msk.bf16.vlgmr.msrb.gmra.mxu2 %vm137_vm6, %v949_v38 }
0x1020   :  { %1313 = vmatpush.bf16.msrb.mxu2 %v1919_v30 }
0x1024   :  { %1314 = vmatpush.bf16.msrb.mxu2 %v1925_v31 }
0x107e   :  { %v1977_v39 = vpop.f32.mrf.mxu2 }
0x1086   :  { %v733_v5 = vpop.f32.mrf.mxu2 }
0x10a2   :  { %v962_v44 = vpop.f32.mrf.mxu2 }
0x10a3   :  { %v966_v45 = vadd.f32 %v962_v44, %v852_v43 }
0x10a5   :  { %1662 = vtanh.f32 %v966_v45  ;;  %v1540_v47 = vmul.f32 -1.442695, %v966_v45 }
0x10a7   :  { %1664 = vpow2.f32 %v1540_v47 }
0x10aa   :  { %v964_v6 = vpop.f32.mrf.mxu2 }
0x10ab   :  { %v1663_v46 = vpop.eup %1662 }
0x10ac   :  { %989 = vrot.lane.b32.xlu1 %v1663_v46, %s1728_s18 }
0x10ad   :  { %v1665_v30 = vpop.eup %1664 }
0x10ae   :  { %v970_v31 = vadd.f32 1.0, %v1665_v30 }
0x10b0   :  { %1666 = vrcp.f32 %v970_v31  ;;  %v982_v54 = vand.u32 2147483648, %v970_v31  ;;  %vm976_vm9 = vweird.f32 %v970_v31  ;;  %v980_v55 = vand.u32 2147483647, %v970_v31 }
0x10b2   :  { %v983_v57 = vor.u32 1.1754944e-38, %v982_v54  ;;  %vm981_vm11 = vcmp.eq.f32.partialorder %v980_v55, 8.507059e+37 }
0x10b4   :  { %360 = vrot.lane.b32.xlu1 %v1843_v42, %s1729_s23 }
0x10b6   :  { %v1667_v48 = vpop.eup %1666 }
0x10b7   :  { %v972_v49 = vmul.f32 %v1667_v48, %v970_v31  ;;  %vm977_vm8 = vweird.f32 %v1667_v48 }
0x10b8   :  { %vm978_vm10 = vmor %vm976_vm9, %vm977_vm8 }
0x10b9   :  { %v973_v51 = vsub.f32 1.0, %v972_v49 }
0x10bb   :  { %v974_v52 = vmul.f32 %v1667_v48, %v973_v51 }
0x10bd   :  { %v975_v53 = vadd.f32 %v1667_v48, %v974_v52 }
0x10bf   :  { %v979_v56 = vsel %vm978_vm10, %v1667_v48, %v975_v53 }
0x10c0   :  { %v984_v42 = vsel %vm981_vm11, %v983_v57, %v979_v56 }
0x10c1   :  { %v987_v61 = vmul.f32 %v984_v42, %v1954_v8 }
0x111e   :  { %v990_v58 = vpop.permute.xlu1 %989 }
0x111f   :  { %v992_v59 = vmul.f32 %v990_v58, %v984_v42 }
0x1121   :  { %994 = vrot.lane.b32.xlu2 %v992_v59, %s1728_s18 }
0x1126   :  { %v361_v60 = vpop.permute.xlu1 %360 }
0x1127   :  { %364 = vst.msk [vmem:[#allocation2 + $0x8] sm:$0xf] %vm197_vm13, %v361_v60 }
0x1129   :  { %443 = vrot.lane.b32.xlu2 %v1862_v15, %s1729_s23 }
0x117b   :  { %v995_v62 = vpop.permute.xlu2 %994 }
0x117c   :  { %v997_v63 = vadd.f32 %v995_v62, %v987_v61 }
0x117e   :  { %1668 = vtanh.f32 %v997_v63 }
0x1183   :  { %v444_v0 = vpop.permute.xlu2 %443 }
0x1184   :  { %v1669_v1 = vpop.eup %1668  ;;  %447 = vst.msk [vmem:[#allocation2 + $0xc] sm:$0xf] %vm197_vm13, %v444_v0 }
0x1185   :  { %1000 = vrot.lane.b32.xlu0 %v1669_v1, %s1728_s18 }
0x118b   :  { %v1583_v2 = vld [vmem:[#allocation2 + $0x8] sm:$0xff] }
0x118c   :  { %1527 = vmatmul.msk.bf16.gmra.mxu3 %vm137_vm6, %v1583_v2 }
0x11f7   :  { %v1001_v3 = vpop.permute.xlu0 %1000 }
0x11f8   :  { %v1003_v4 = vmul.f32 %v1001_v3, %v984_v42 }
0x11fa   :  { %v1005_v7 = vpack.c.bf16 %v1003_v4, %v1003_v4 }
0x11fc   :  { %1007 = vrot.lane.b32.xlu0 %v1005_v7, %s1729_s23 }
0x120f   :  { %v854_v10 = vpop.f32.mrf.mxu3 }
0x1210   :  { %v855_v11 = vadd.f32 %v1943_v40, %v854_v10 }
0x1217   :  { %v856_v6 = vpop.f32.mrf.mxu3 }
0x1218   :  { %v857_v46 = vadd.f32 %v1943_v40, %v856_v6 }
0x126e   :  { %v1008_v15 = vpop.permute.xlu0 %1007 }
0x126f   :  { %1541 = vmatmul.msk.bf16.vlgmr.msrb.gmra.mxu0 %vm137_vm6, %v1008_v15 }
0x12ec   :  { %v1021_v12 = vpop.f32.mrf.mxu0 }
0x12ed   :  { %v1025_v13 = vadd.f32 %v1021_v12, %v855_v11 }
0x12ef   :  { %1670 = vtanh.f32 %v1025_v13  ;;  %v1542_v18 = vmul.f32 -1.442695, %v1025_v13 }
0x12f1   :  { %1672 = vpow2.f32 %v1542_v18 }
0x12f4   :  { %v1023_v14 = vpop.f32.mrf.mxu0 }
0x12f5   :  { %v1671_v16 = vpop.eup %1670 }
0x12f6   :  { %1048 = vrot.lane.b32.xlu1 %v1671_v16, %s1728_s18 }
0x12f7   :  { %v1673_v19 = vpop.eup %1672 }
0x12f8   :  { %v1029_v20 = vadd.f32 1.0, %v1673_v19 }
0x12fa   :  { %1674 = vrcp.f32 %v1029_v20  ;;  %v1041_v24 = vand.u32 2147483648, %v1029_v20  ;;  %vm1035_vm14 = vweird.f32 %v1029_v20  ;;  %v1039_v26 = vand.u32 2147483647, %v1029_v20 }
0x12fc   :  { %v1042_v29 = vor.u32 1.1754944e-38, %v1041_v24  ;;  %vm1040_vm0 = vcmp.eq.f32.partialorder %v1039_v26, 8.507059e+37 }
0x1300   :  { %v1675_v21 = vpop.eup %1674 }
0x1301   :  { %v1031_v22 = vmul.f32 %v1675_v21, %v1029_v20  ;;  %vm1036_vm12 = vweird.f32 %v1675_v21 }
0x1302   :  { %vm1037_vm15 = vmor %vm1035_vm14, %vm1036_vm12 }
0x1303   :  { %v1032_v8 = vsub.f32 1.0, %v1031_v22 }
0x1305   :  { %v1033_v23 = vmul.f32 %v1675_v21, %v1032_v8 }
0x1307   :  { %v1034_v17 = vadd.f32 %v1675_v21, %v1033_v23 }
0x1309   :  { %v1038_v27 = vsel %vm1037_vm15, %v1675_v21, %v1034_v17 }
0x130a   :  { %v1043_v33 = vsel %vm1040_vm0, %v1042_v29, %v1038_v27 }
0x130b   :  { %v1046_v35 = vmul.f32 %v1043_v33, %v997_v63 }
0x1368   :  { %v1049_v32 = vpop.permute.xlu1 %1048 }
0x1369   :  { %v1051_v34 = vmul.f32 %v1049_v32, %v1043_v33 }
0x136b   :  { %1053 = vrot.lane.b32.xlu2 %v1051_v34, %s1728_s18 }
0x13c5   :  { %v1054_v37 = vpop.permute.xlu2 %1053 }
0x13c6   :  { %v1056_v38 = vadd.f32 %v1054_v37, %v1046_v35 }
0x13c8   :  { %1676 = vtanh.f32 %v1056_v38 }
0x13ce   :  { %v1677_v5 = vpop.eup %1676 }
0x13cf   :  { %1059 = vrot.lane.b32.xlu0 %v1677_v5, %s1728_s18 }
0x1441   :  { %v1060_v41 = vpop.permute.xlu0 %1059 }
0x1442   :  { %v1062_v43 = vmul.f32 %v1060_v41, %v1043_v33  ;;  %v1726_v33 = vld [vmem:[%s2073_s3] ss:$0 sm:$0xff] }
0x1443   :  { %v110_v34 = vadd.f32 %v1726_v33, %v1993_v9 }
0x1444   :  { %v1064_v44 = vpack.c.bf16 %v1062_v43, %v1062_v43 }
0x1445   :  { %v735_v37 = vadd.f32 %v1977_v39, %v110_v34 }
0x1446   :  { %1066 = vrot.lane.b32.xlu1 %v1064_v44, %s1729_s23 }
0x14b8   :  { %v1067_v45 = vpop.permute.xlu1 %1066 }
0x14b9   :  { %1543 = vmatmul.msk.bf16.vlgmr.msra.gmra.mxu1 %vm137_vm6, %v1067_v45 }
0x1536   :  { %v1080_v47 = vpop.f32.mrf.mxu1 }
0x1537   :  { %v1084_v30 = vadd.f32 %v1080_v47, %v857_v46  ;;  %v1501_v46 = vmul.f32 -1.442695, %v735_v37 }
0x1539   :  { %1678 = vtanh.f32 %v1084_v30  ;;  %v1544_v49 = vmul.f32 -1.442695, %v1084_v30 }
0x153b   :  { %1680 = vpow2.f32 %v1544_v49 }
0x153e   :  { %v1082_v31 = vpop.f32.mrf.mxu1 }
0x153f   :  { %v1679_v48 = vpop.eup %1678 }
0x1540   :  { %1107 = vrot.lane.b32.xlu2 %v1679_v48, %s1728_s18 }
0x1541   :  { %v1681_v51 = vpop.eup %1680 }
0x1542   :  { %v1088_v52 = vadd.f32 1.0, %v1681_v51 }
0x1544   :  { %1682 = vrcp.f32 %v1088_v52  ;;  %v1100_v58 = vand.u32 2147483648, %v1088_v52  ;;  %vm1094_vm3 = vweird.f32 %v1088_v52  ;;  %v1098_v42 = vand.u32 2147483647, %v1088_v52 }
0x1546   :  { %v1101_v60 = vor.u32 1.1754944e-38, %v1100_v58  ;;  %vm1099_vm5 = vcmp.eq.f32.partialorder %v1098_v42, 8.507059e+37 }
0x1548   :  { %526 = vrot.lane.b32.xlu2 %v1877_v50, %s1729_s23 }
0x154a   :  { %v1683_v53 = vpop.eup %1682 }
0x154b   :  { %v1090_v54 = vmul.f32 %v1683_v53, %v1088_v52  ;;  %vm1095_vm2 = vweird.f32 %v1683_v53 }
0x154c   :  { %vm1096_vm4 = vmor %vm1094_vm3, %vm1095_vm2 }
0x154d   :  { %v1091_v55 = vsub.f32 1.0, %v1090_v54 }
0x154f   :  { %v1092_v56 = vmul.f32 %v1683_v53, %v1091_v55 }
0x1551   :  { %v1093_v57 = vadd.f32 %v1683_v53, %v1092_v56 }
0x1553   :  { %v1097_v59 = vsel %vm1096_vm4, %v1683_v53, %v1093_v57 }
0x1554   :  { %v1102_v50 = vsel %vm1099_vm5, %v1101_v60, %v1097_v59 }
0x1555   :  { %v1105_v0 = vmul.f32 %v1102_v50, %v1056_v38 }
0x159a   :  { %v1108_v61 = vpop.permute.xlu2 %1107 }
0x159b   :  { %v1110_v62 = vmul.f32 %v1108_v61, %v1102_v50 }
0x159d   :  { %1112 = vrot.lane.b32.xlu0 %v1110_v62, %s1728_s18 }
0x15a2   :  { %v527_v63 = vpop.permute.xlu2 %526 }
0x15a3   :  { %530 = vst.msk [vmem:[#allocation2 + $0x10] sm:$0xf] %vm197_vm13, %v527_v63 }
0x15a5   :  { %609 = vrot.lane.b32.xlu0 %v1910_v25, %s1729_s23 }
0x160f   :  { %v1113_v1 = vpop.permute.xlu0 %1112 }
0x1610   :  { %v1115_v2 = vadd.f32 %v1113_v1, %v1105_v0 }
0x1612   :  { %1684 = vtanh.f32 %v1115_v2 }
0x1617   :  { %v610_v3 = vpop.permute.xlu0 %609 }
0x1618   :  { %v1685_v4 = vpop.eup %1684  ;;  %613 = vst.msk [vmem:[#allocation2 + $0x14] sm:$0xf] %vm197_vm13, %v610_v3 }
0x1619   :  { %1118 = vrot.lane.b32.xlu1 %v1685_v4, %s1728_s18 }
0x161f   :  { %v1584_v7 = vld [vmem:[#allocation2 + $0x10] sm:$0xff] }
0x1620   :  { %1528 = vmatmul.msk.bf16.gmra.mxu3 %vm137_vm6, %v1584_v7 }
0x168b   :  { %v1119_v15 = vpop.permute.xlu1 %1118 }
0x168c   :  { %v1121_v10 = vmul.f32 %v1119_v15, %v1102_v50 }
0x168e   :  { %v1123_v11 = vpack.c.bf16 %v1121_v10, %v1121_v10 }
0x1690   :  { %1125 = vrot.lane.b32.xlu1 %v1123_v11, %s1729_s23 }
0x16a3   :  { %v859_v25 = vpop.f32.mrf.mxu3 }
0x16a4   :  { %v860_v13 = vadd.f32 %v1943_v40, %v859_v25 }
0x16ab   :  { %v861_v50 = vpop.f32.mrf.mxu3 }
0x16ac   :  { %v862_v62 = vadd.f32 %v1943_v40, %v861_v50 }
0x1702   :  { %v1126_v12 = vpop.permute.xlu1 %1125 }
0x1703   :  { %1545 = vmatmul.msk.bf16.vlgmr.msra.gmra.mxu2 %vm137_vm6, %v1126_v12 }
0x1786   :  { %v1139_v14 = vpop.f32.mrf.mxu2 }
0x1787   :  { %v1143_v16 = vadd.f32 %v1139_v14, %v860_v13 }
0x1789   :  { %1686 = vtanh.f32 %v1143_v16  ;;  %v1546_v20 = vmul.f32 -1.442695, %v1143_v16 }
0x178b   :  { %1688 = vpow2.f32 %v1546_v20 }
0x178e   :  { %v1141_v18 = vpop.f32.mrf.mxu2 }
0x178f   :  { %v1687_v19 = vpop.eup %1686 }
0x1790   :  { %1166 = vrot.lane.b32.xlu2 %v1687_v19, %s1728_s18 }
0x1791   :  { %v1689_v21 = vpop.eup %1688 }
0x1792   :  { %v1147_v22 = vadd.f32 1.0, %v1689_v21 }
0x1794   :  { %1690 = vrcp.f32 %v1147_v22  ;;  %v1159_v27 = vand.u32 2147483648, %v1147_v22  ;;  %vm1153_vm8 = vweird.f32 %v1147_v22  ;;  %v1157_v29 = vand.u32 2147483647, %v1147_v22 }
0x1795   :  { %1692 = vtanh.f32 %v735_v37 }
0x1796   :  { %v1160_v35 = vor.u32 1.1754944e-38, %v1159_v27  ;;  %vm1158_vm10 = vcmp.eq.f32.partialorder %v1157_v29, 8.507059e+37 }
0x179a   :  { %v1691_v8 = vpop.eup %1690 }
0x179b   :  { %v1149_v23 = vmul.f32 %v1691_v8, %v1147_v22  ;;  %vm1154_vm7 = vweird.f32 %v1691_v8  ;;  %v1693_v43 = vpop.eup %1692 }
0x179c   :  { %vm1155_vm9 = vmor %vm1153_vm8, %vm1154_vm7 }
0x179d   :  { %v1150_v17 = vsub.f32 1.0, %v1149_v23 }
0x179f   :  { %v1151_v24 = vmul.f32 %v1691_v8, %v1150_v17 }
0x17a1   :  { %v1152_v26 = vadd.f32 %v1691_v8, %v1151_v24 }
0x17a3   :  { %v1156_v32 = vsel %vm1155_vm9, %v1691_v8, %v1152_v26 }
0x17a4   :  { %v1161_v5 = vsel %vm1158_vm10, %v1160_v35, %v1156_v32 }
0x17a5   :  { %v1164_v44 = vmul.f32 %v1161_v5, %v1115_v2 }
0x17ea   :  { %v1167_v38 = vpop.permute.xlu2 %1166 }
0x17eb   :  { %v1169_v41 = vmul.f32 %v1167_v38, %v1161_v5 }
0x17ed   :  { %1171 = vrot.lane.b32.xlu0 %v1169_v41, %s1728_s18 }
0x17f5   :  { %758 = vrot.lane.b32.xlu0 %v1693_v43, %s1728_s18 }
0x185f   :  { %v1172_v45 = vpop.permute.xlu0 %1171 }
0x1860   :  { %v2023_v6 = vadd.f32 %v1172_v45, %v1164_v44 }
0x1862   :  { %1694 = vtanh.f32 %v2023_v6 }
0x1863   :  { %1696 = vpow2.f32 %v1501_v46 }
0x1867   :  { %v759_v42 = vpop.permute.xlu0 %758 }
0x1868   :  { %v1695_v9 = vpop.eup %1694 }
0x1869   :  { %1177 = vrot.lane.b32.xlu1 %v1695_v9, %s1728_s18  ;;  %v1697_v39 = vpop.eup %1696 }
0x186a   :  { %v739_v47 = vadd.f32 1.0, %v1697_v39 }
0x186c   :  { %1698 = vrcp.f32 %v739_v47  ;;  %v751_v55 = vand.u32 2147483648, %v739_v47  ;;  %vm745_vm12 = vweird.f32 %v739_v47  ;;  %v749_v56 = vand.u32 2147483647, %v739_v47 }
0x186e   :  { %v752_v58 = vor.u32 1.1754944e-38, %v751_v55  ;;  %vm750_vm15 = vcmp.eq.f32.partialorder %v749_v56, 8.507059e+37 }
0x1872   :  { %v1699_v30 = vpop.eup %1698 }
0x1873   :  { %v741_v31 = vmul.f32 %v1699_v30, %v739_v47  ;;  %vm746_vm11 = vweird.f32 %v1699_v30 }
0x1874   :  { %vm747_vm14 = vmor %vm745_vm12, %vm746_vm11 }
0x1875   :  { %v742_v48 = vsub.f32 1.0, %v741_v31 }
0x1877   :  { %v743_v49 = vmul.f32 %v1699_v30, %v742_v48 }
0x1879   :  { %v744_v53 = vadd.f32 %v1699_v30, %v743_v49 }
0x187b   :  { %v748_v57 = vsel %vm747_vm14, %v1699_v30, %v744_v53 }
0x187c   :  { %v753_v59 = vsel %vm750_vm15, %v752_v58, %v748_v57 }
0x187d   :  { %v761_v60 = vmul.f32 %v759_v42, %v753_v59  ;;  %v756_v2 = vmul.f32 %v753_v59, %v1950_v36 }
0x18db   :  { %v1178_v51 = vpop.permute.xlu1 %1177 }
0x18dc   :  { %v1180_v52 = vmul.f32 %v1178_v51, %v1161_v5 }
0x18de   :  { %v1182_v54 = vpack.c.bf16 %v1180_v52, %v1180_v52 }
0x18e0   :  { %1184 = vrot.lane.b32.xlu2 %v1182_v54, %s1729_s23 }
0x18e8   :  { %763 = vrot.lane.b32.xlu2 %v761_v60, %s1728_s18 }
0x193a   :  { %v1185_v61 = vpop.permute.xlu2 %1184 }
0x193b   :  { %1547 = vmatmul.msk.bf16.vlgmr.msra.gmra.mxu0 %vm137_vm6, %v1185_v61 }
0x1942   :  { %v764_v1 = vpop.permute.xlu2 %763 }
0x1943   :  { %v766_v3 = vadd.f32 %v764_v1, %v756_v2 }
0x19b8   :  { %v1198_v63 = vpop.f32.mrf.mxu0 }
0x19b9   :  { %v1202_v0 = vadd.f32 %v1198_v63, %v862_v62 }
0x19bb   :  { %1700 = vtanh.f32 %v1202_v0  ;;  %v1548_v10 = vmul.f32 -1.442695, %v1202_v0 }
0x19bc   :  { %1702 = vtanh.f32 %v766_v3 }
0x19bd   :  { %1704 = vpow2.f32 %v1548_v10 }
0x19c0   :  { %v1200_v4 = vpop.f32.mrf.mxu0 }
0x19c1   :  { %v1701_v7 = vpop.eup %1700 }
0x19c2   :  { %1225 = vrot.lane.b32.xlu1 %v1701_v7, %s1728_s18  ;;  %v1703_v15 = vpop.eup %1702 }
0x19c3   :  { %v1705_v11 = vpop.eup %1704 }
0x19c4   :  { %v1206_v12 = vadd.f32 1.0, %v1705_v11 }
0x19c6   :  { %1706 = vrcp.f32 %v1206_v12  ;;  %v1218_v36 = vand.u32 2147483648, %v1206_v12  ;;  %vm1212_vm2 = vweird.f32 %v1206_v12  ;;  %v1216_v19 = vand.u32 2147483647, %v1206_v12 }
0x19c8   :  { %v1219_v21 = vor.u32 1.1754944e-38, %v1218_v36  ;;  %vm1217_vm4 = vcmp.eq.f32.partialorder %v1216_v19, 8.507059e+37 }
0x19ca   :  { %769 = vrot.lane.b32.xlu1 %v1703_v15, %s1728_s18 }
0x19cc   :  { %v1707_v25 = vpop.eup %1706 }
0x19cd   :  { %v1208_v13 = vmul.f32 %v1707_v25, %v1206_v12  ;;  %vm1213_vm0 = vweird.f32 %v1707_v25 }
0x19ce   :  { %vm1214_vm3 = vmor %vm1212_vm2, %vm1213_vm0 }
0x19cf   :  { %v1209_v14 = vsub.f32 1.0, %v1208_v13 }
0x19d1   :  { %v1210_v16 = vmul.f32 %v1707_v25, %v1209_v14 }
0x19d3   :  { %v1211_v18 = vadd.f32 %v1707_v25, %v1210_v16 }
0x19d5   :  { %v1215_v20 = vsel %vm1214_vm3, %v1707_v25, %v1211_v18 }
0x19d6   :  { %v1220_v8 = vsel %vm1217_vm4, %v1219_v21, %v1215_v20 }
0x19d7   :  { %v1223_v27 = vmul.f32 %v1220_v8, %v2023_v6 }
0x1a34   :  { %v1226_v22 = vpop.permute.xlu1 %1225 }
0x1a35   :  { %v1228_v23 = vmul.f32 %v1226_v22, %v1220_v8 }
0x1a37   :  { %1230 = vrot.lane.b32.xlu0 %v1228_v23, %s1728_s18 }
0x1a3c   :  { %v770_v17 = vpop.permute.xlu1 %769 }
0x1a3d   :  { %v772_v24 = vmul.f32 %v770_v17, %v753_v59 }
0x1a3f   :  { %v773_v26 = vpack.c.bf16 %v772_v24, %v772_v24  ;;  %692 = vrot.lane.b32.xlu0 %v1966_v28, %s1729_s23 }
0x1a41   :  { %775 = vrot.lane.b32.xlu1 %v773_v26, %s1729_s23 }
0x1aa9   :  { %v1231_v29 = vpop.permute.xlu0 %1230 }
0x1aaa   :  { %v1233_v32 = vadd.f32 %v1231_v29, %v1223_v27  ;;  %v1591_v29 = vld [vmem:[%s2077_s7 + $0x8] sm:$0xff] }
0x1aab   :  { %1391 = vmatpush.bf16.msrb.mxu0 %v1591_v29 }
0x1aac   :  { %1708 = vtanh.f32 %v1233_v32 }
0x1ab1   :  { %v693_v33 = vpop.permute.xlu0 %692 }
0x1ab2   :  { %v1709_v34 = vpop.eup %1708  ;;  %696 = vst.msk [vmem:[#allocation2 + $0x18] sm:$0xf] %vm197_vm13, %v693_v33 }
0x1ab3   :  { %1236 = vrot.lane.b32.xlu2 %v1709_v34, %s1728_s18  ;;  %v776_v35 = vpop.permute.xlu1 %775 }
0x1ab4   :  { %779 = vst.msk [vmem:[#allocation2 + $0x1c] sm:$0xf] %vm197_vm13, %v776_v35 }
0x1abb   :  { %v1585_v37 = vld [vmem:[#allocation2 + $0x18] sm:$0xff] }
0x1abc   :  { %1529 = vmatmul.msk.bf16.gmra.mxu3 %vm137_vm6, %v1585_v37 }
0x1b0d   :  { %v1237_v28 = vpop.permute.xlu2 %1236 }
0x1b0e   :  { %v1239_v38 = vmul.f32 %v1237_v28, %v1220_v8  ;;  %v1597_v28 = vld [vmem:[%s2078_s8] ss:$0 sm:$0xff] }
0x1b10   :  { %v1241_v5 = vpack.c.bf16 %v1239_v38, %v1239_v38 }
0x1b12   :  { %1243 = vrot.lane.b32.xlu2 %v1241_v5, %s1729_s23 }
0x1b3f   :  { %v864_v43 = vpop.f32.mrf.mxu3 }
0x1b40   :  { %v865_v44 = vadd.f32 %v1943_v40, %v864_v43 }
0x1b47   :  { %v866_v2 = vpop.f32.mrf.mxu3 }
0x1b48   :  { %v867_v3 = vadd.f32 %v1943_v40, %v866_v2 }
0x1b6c   :  { %v1244_v41 = vpop.permute.xlu2 %1243 }
0x1b6d   :  { %1549 = vmatmul.msk.bf16.vlgmr.msrb.gmra.mxu1 %vm137_vm6, %v1244_v41 }
0x1bea   :  { %v1257_v45 = vpop.f32.mrf.mxu1 }
0x1beb   :  { %v1261_v6 = vadd.f32 %v1257_v45, %v865_v44 }
0x1bed   :  { %1710 = vtanh.f32 %v1261_v6  ;;  %v1550_v39 = vmul.f32 -1.442695, %v1261_v6 }
0x1bef   :  { %1712 = vpow2.f32 %v1550_v39 }
0x1bf2   :  { %v1259_v9 = vpop.f32.mrf.mxu1 }
0x1bf3   :  { %v1711_v46 = vpop.eup %1710 }
0x1bf4   :  { %1284 = vrot.lane.b32.xlu0 %v1711_v46, %s1728_s18 }
0x1bf5   :  { %v1713_v47 = vpop.eup %1712 }
0x1bf6   :  { %v1265_v30 = vadd.f32 1.0, %v1713_v47 }
0x1bf8   :  { %1714 = vrcp.f32 %v1265_v30  ;;  %v1277_v53 = vand.u32 2147483648, %v1265_v30  ;;  %vm1271_vm5 = vweird.f32 %v1265_v30  ;;  %v1275_v54 = vand.u32 2147483647, %v1265_v30 }
0x1bfa   :  { %v1278_v56 = vor.u32 1.1754944e-38, %v1277_v53  ;;  %vm1276_vm8 = vcmp.eq.f32.partialorder %v1275_v54, 8.507059e+37 }
0x1bfe   :  { %v1715_v31 = vpop.eup %1714 }
0x1bff   :  { %v1267_v48 = vmul.f32 %v1715_v31, %v1265_v30  ;;  %vm1272_vm13 = vweird.f32 %v1715_v31 }
0x1c00   :  { %vm1273_vm7 = vmor %vm1271_vm5, %vm1272_vm13 }
0x1c01   :  { %v1268_v49 = vsub.f32 1.0, %v1267_v48 }
0x1c03   :  { %v1269_v51 = vmul.f32 %v1715_v31, %v1268_v49 }
0x1c05   :  { %v1270_v52 = vadd.f32 %v1715_v31, %v1269_v51 }
0x1c07   :  { %v1274_v55 = vsel %vm1273_vm7, %v1715_v31, %v1270_v52 }
0x1c08   :  { %v1279_v58 = vsel %vm1276_vm8, %v1278_v56, %v1274_v55 }
0x1c09   :  { %v1282_v59 = vmul.f32 %v1279_v58, %v1233_v32  ;;  %v1590_v32 = vld [vmem:[%s2077_s7] sm:$0xff] }
0x1c0a   :  { %1392 = vmatpush.bf16.msrb.mxu0 %v1590_v32 }
0x1c66   :  { %v1285_v57 = vpop.permute.xlu0 %1284 }
0x1c67   :  { %v1287_v42 = vmul.f32 %v1285_v57, %v1279_v58 }
0x1c69   :  { %1289 = vrot.lane.b32.xlu1 %v1287_v42, %s1728_s18 }
0x1cdb   :  { %v1290_v60 = vpop.permute.xlu1 %1289 }
0x1cdc   :  { %v1292_v61 = vadd.f32 %v1290_v60, %v1282_v59 }
0x1cde   :  { %1716 = vtanh.f32 %v1292_v61 }
0x1ce4   :  { %v1717_v50 = vpop.eup %1716 }
0x1ce5   :  { %1295 = vrot.lane.b32.xlu2 %v1717_v50, %s1728_s18 }
0x1d3f   :  { %v1296_v62 = vpop.permute.xlu2 %1295 }
0x1d40   :  { %v1298_v63 = vmul.f32 %v1296_v62, %v1279_v58 }
0x1d42   :  { %v1300_v0 = vpack.c.bf16 %v1298_v63, %v1298_v63 }
0x1d44   :  { %1302 = vrot.lane.b32.xlu0 %v1300_v0, %s1729_s23 }
0x1db6   :  { %v1303_v1 = vpop.permute.xlu0 %1302 }
0x1db7   :  { %1551 = vmatmul.msk.bf16.vlgmr.msrb.gmra.mxu2 %vm137_vm6, %v1303_v1 }
0x1e3a   :  { %v1316_v4 = vpop.f32.mrf.mxu2 }
0x1e3b   :  { %v1320_v7 = vadd.f32 %v1316_v4, %v867_v3 }
0x1e3d   :  { %1718 = vtanh.f32 %v1320_v7  ;;  %v1552_v11 = vmul.f32 -1.442695, %v1320_v7 }
0x1e3f   :  { %1720 = vpow2.f32 %v1552_v11 }
0x1e42   :  { %v1318_v15 = vpop.f32.mrf.mxu2 }
0x1e43   :  { %v1719_v10 = vpop.eup %1718 }
0x1e44   :  { %1343 = vrot.lane.b32.xlu1 %v1719_v10, %s1728_s18 }
0x1e45   :  { %v1721_v12 = vpop.eup %1720 }
0x1e46   :  { %v1324_v25 = vadd.f32 1.0, %v1721_v12 }
0x1e48   :  { %1722 = vrcp.f32 %v1324_v25  ;;  %v1336_v19 = vand.u32 2147483648, %v1324_v25  ;;  %vm1330_vm10 = vweird.f32 %v1324_v25  ;;  %v1334_v40 = vand.u32 2147483647, %v1324_v25 }
0x1e4a   :  { %v1337_v21 = vor.u32 1.1754944e-38, %v1336_v19  ;;  %vm1335_vm12 = vcmp.eq.f32.partialorder %v1334_v40, 8.507059e+37 }
0x1e4e   :  { %v1723_v13 = vpop.eup %1722 }
0x1e4f   :  { %v1326_v14 = vmul.f32 %v1723_v13, %v1324_v25  ;;  %vm1331_vm9 = vweird.f32 %v1723_v13 }
0x1e50   :  { %vm1332_vm11 = vmor %vm1330_vm10, %vm1331_vm9 }
0x1e51   :  { %v1327_v16 = vsub.f32 1.0, %v1326_v14 }
0x1e53   :  { %v1328_v18 = vmul.f32 %v1723_v13, %v1327_v16 }
0x1e55   :  { %v1329_v36 = vadd.f32 %v1723_v13, %v1328_v18 }
0x1e57   :  { %v1333_v20 = vsel %vm1332_vm11, %v1723_v13, %v1329_v36 }
0x1e58   :  { %v1338_v8 = vsel %vm1335_vm12, %v1337_v21, %v1333_v20 }
0x1e59   :  { %v1341_v17 = vmul.f32 %v1338_v8, %v1292_v61 }
0x1eb6   :  { %v1344_v22 = vpop.permute.xlu1 %1343 }
0x1eb7   :  { %v1346_v23 = vmul.f32 %v1344_v22, %v1338_v8 }
0x1eb9   :  { %1348 = vrot.lane.b32.xlu2 %v1346_v23, %s1728_s18 }
0x1f13   :  { %v1349_v24 = vpop.permute.xlu2 %1348 }
0x1f14   :  { %v1351_v26 = vadd.f32 %v1349_v24, %v1341_v17 }
0x1f16   :  { %1724 = vtanh.f32 %v1351_v26 }
0x1f1c   :  { %v1725_v27 = vpop.eup %1724 }
0x1f1d   :  { %1354 = vrot.lane.b32.xlu0 %v1725_v27, %s1728_s18 }
0x1f8f   :  { %v1355_v33 = vpop.permute.xlu0 %1354 }
0x1f90   :  { %v1357_v34 = vmul.f32 %v1355_v33, %v1338_v8 }
0x1f92   :  { %v1358_v35 = vpack.c.bf16 %v1357_v34, %v1357_v34 }
0x1f94   :  { %1368 = vrot.lane.b32.xlu1 %v1358_v35, %s1729_s23 }
0x2006   :  { %v1369_v37 = vpop.permute.xlu1 %1368 }
0x2007   :  { %1561 = vmatmul.msk.bf16.vlgmr.msrb.gmra.mxu0 %vm137_vm6, %v1369_v37 }
0x2084   :  { %v1394_v38 = vpop.f32.mrf.mxu0 }
0x2085   :  { %v1395_v5 = vadd.f32 %v1597_v28, %v1394_v38 }
0x2087   :  { %1398 = vst.msk [vmem:[%s2079_s9] sm:$0xff] %vm66_vm1, %v1395_v5 }
0x208c   :  { %v1396_v41 = vpop.f32.mrf.mxu0 }

</bundles_post_ra>
